<compile_context>
chip_gen: v5e
topology: v5e:2x2
jax: 0.10.0
libtpu: 0.0.40
codegen_flags: <defaults>
</compile_context>

<pallas_src>
import functools

import jax
import jax.numpy as jnp
from jax import lax
from jax.experimental import pallas as pl
from jax.experimental.pallas import tpu as pltpu

BN_EPS = 1e-5
LANE = 128


def _round_up(x, m):
    return (x + m - 1) // m * m


def _tpu_vmem_capacity_bytes():
    try:
        return int(pltpu.get_tpu_info().vmem_capacity_bytes)
    except Exception:
        return 64 << 20  # conservative default (v7x per-core VMEM)


# ---------------------------------------------------------------------------
# Fused path: one pallas_call, grid = (phase, m_tile).
# ---------------------------------------------------------------------------
def _fused_kernel(cols_ref, w_ref, gamma_ref, beta_ref, o_ref,
                  conv_vmem, sum_ref, sq_ref, stats_ref,
                  *, m_true, tm, c_out):
    p = pl.program_id(0)          # 0 = GEMM + stats, 1 = normalize + ReLU
    i = pl.program_id(1)          # M-tile index
    n = pl.num_programs(1)

    @pl.when((p == 0) & (i == 0))
    def _init():
        sum_ref[...] = jnp.zeros_like(sum_ref)
        sq_ref[...] = jnp.zeros_like(sq_ref)

    @pl.when(p == 0)
    def _gemm_and_stats():
        # Conv as GEMM on the MXU: bf16 inputs, f32 accumulation.
        conv = jnp.dot(cols_ref[...], w_ref[...],
                       preferred_element_type=jnp.float32)
        off = pl.multiple_of(i * tm, tm)
        conv_vmem[pl.ds(off, tm), :] = conv
        # Padded rows of cols are exact zeros -> contribute nothing to stats.
        sum_ref[...] += jnp.sum(conv, axis=0, keepdims=True)
        sq_ref[...] += jnp.sum(conv * conv, axis=0, keepdims=True)

    @pl.when((p == 0) & (i == n - 1))
    def _finalize_stats():
        inv_m = 1.0 / m_true
        mean = sum_ref[...] * inv_m
        # TODO(synk): E[x^2]-E[x]^2 can lose precision for large-mean features;
        # use a shifted sumsq if training-quality BN stats are needed.
        var = jnp.maximum(sq_ref[...] * inv_m - mean * mean, 0.0)
        inv_std = lax.rsqrt(var + BN_EPS)
        scale = gamma_ref[...] * inv_std
        stats_ref[0:1, :] = scale
        stats_ref[1:2, :] = beta_ref[...] - mean * scale

    @pl.when(p == 1)
    def _normalize_relu():
        off = pl.multiple_of(i * tm, tm)
        conv = conv_vmem[pl.ds(off, tm), :]
        y = jnp.maximum(conv * stats_ref[0:1, :] + stats_ref[1:2, :], 0.0)
        o_ref[...] = y[:, :c_out].astype(o_ref.dtype)


# ---------------------------------------------------------------------------
# Fallback (conv result too large for VMEM): two passes, bf16 intermediate.
# ---------------------------------------------------------------------------
def _gemm_stats_kernel(cols_ref, w_ref, gamma_ref, beta_ref,
                       conv_ref, stats_ref, sum_ref, sq_ref, *, m_true):
    i = pl.program_id(0)

    @pl.when(i == 0)
    def _init():
        sum_ref[...] = jnp.zeros_like(sum_ref)
        sq_ref[...] = jnp.zeros_like(sq_ref)
        stats_ref[...] = jnp.zeros_like(stats_ref)

    conv = jnp.dot(cols_ref[...], w_ref[...], preferred_element_type=jnp.float32)
    conv_ref[...] = conv.astype(conv_ref.dtype)   # bf16 writeback: half the HBM bytes
    sum_ref[...] += jnp.sum(conv, axis=0, keepdims=True)
    sq_ref[...] += jnp.sum(conv * conv, axis=0, keepdims=True)

    @pl.when(i == pl.num_programs(0) - 1)
    def _finalize():
        inv_m = 1.0 / m_true
        mean = sum_ref[...] * inv_m
        var = jnp.maximum(sq_ref[...] * inv_m - mean * mean, 0.0)
        inv_std = lax.rsqrt(var + BN_EPS)
        scale = gamma_ref[...] * inv_std
        stats_ref[0:1, :] = scale
        stats_ref[1:2, :] = beta_ref[...] - mean * scale


def _norm_relu_kernel(conv_ref, stats_ref, o_ref, *, c_out):
    y = conv_ref[...].astype(jnp.float32) * stats_ref[0:1, :] + stats_ref[1:2, :]
    o_ref[...] = jnp.maximum(y[:, :c_out], 0.0).astype(o_ref.dtype)


# ---------------------------------------------------------------------------
# Wrapper
# ---------------------------------------------------------------------------
@functools.partial(jax.jit, static_argnames=("stride", "padding"))
def std_conv(x_nchw, w_oihw, gamma, beta, *, stride, padding):
    """Conv2d(bias=False) -> BatchNorm2d(training batch stats, affine) -> ReLU."""
    N, C_in, H, W = x_nchw.shape
    C_out, C_in_w, KH, KW = w_oihw.shape
    assert C_in == C_in_w

    H_out = (H + 2 * padding - KH) // stride + 1
    W_out = (W + 2 * padding - KW) // stride + 1
    M = N * H_out * W_out
    K = KH * KW * C_in

    # ---- wrapper glue: NCHW -> NHWC (bf16), spatial zero-pad, im2col ----
    x = jnp.transpose(x_nchw, (0, 2, 3, 1)).astype(jnp.bfloat16)
    x = jnp.pad(x, ((0, 0), (padding, padding), (padding, padding), (0, 0)))
    patches = []
    for kh in range(KH):
        for kw in range(KW):
            patches.append(
                x[:, kh:kh + stride * H_out:stride, kw:kw + stride * W_out:stride, :]
            )
    cols = jnp.stack(patches, axis=3).reshape(M, K)

    # ---- lane-aligned padded shapes (zeros are GEMM / stat neutral) ----
    K_pad = _round_up(K, LANE)
    C_pad = _round_up(C_out, LANE)

    cap = _tpu_vmem_capacity_bytes()
    vmem_limit = int(cap * 5 // 8)
    budget = cap // 3                      # ~40 MiB on v5e/v6e, ~20 MiB on v7x

    # M-tile size from the per-generation VMEM budget (double-buffered tiles).
    def _tile_bytes(t):
        return (2 * (t * K_pad * 2)          # cols tile, bf16, double buffered
                + 2 * (t * C_out * 4)        # output tile, f32, double buffered
                + 2 * (K_pad * C_pad * 2))   # weights, bf16, double buffered
    tm = 1024
    while tm > 128 and _tile_bytes(tm) > budget // 2:
        tm //= 2
    if M < tm:
        tm = max(16, _round_up(M, 16))
    M_pad = _round_up(M, tm)
    n_tiles = M_pad // tm

    cols = jnp.pad(cols, ((0, M_pad - M), (0, K_pad - K)))
    w2d = jnp.transpose(w_oihw.astype(jnp.bfloat16), (2, 3, 1, 0)).reshape(K, C_out)
    w2d = jnp.pad(w2d, ((0, K_pad - K), (0, C_pad - C_out)))
    gamma2 = jnp.pad(gamma.astype(jnp.float32).reshape(1, C_out),
                     ((0, 0), (0, C_pad - C_out)))
    beta2 = jnp.pad(beta.astype(jnp.float32).reshape(1, C_out),
                    ((0, 0), (0, C_pad - C_out)))

    # Fused path keeps the whole f32 conv result resident in VMEM scratch.
    conv_scratch_bytes = M_pad * C_pad * 4
    use_fused = conv_scratch_bytes + _tile_bytes(tm) <= budget

    if use_fused:
        out = pl.pallas_call(
            functools.partial(_fused_kernel, m_true=float(M), tm=tm, c_out=C_out),
            out_shape=jax.ShapeDtypeStruct((M_pad, C_out), jnp.float32),
            grid=(2, n_tiles),
            in_specs=[
                # cols: real tiles in phase 0; parked on block 0 during phase 1.
                pl.BlockSpec((tm, K_pad), lambda p, i: ((1 - p) * i, 0)),
                pl.BlockSpec((K_pad, C_pad), lambda p, i: (0, 0)),
                pl.BlockSpec((1, C_pad), lambda p, i: (0, 0)),
                pl.BlockSpec((1, C_pad), lambda p, i: (0, 0)),
            ],
            # Output parked on block 0 during phase 0 (no spurious writeback);
            # real tiles in phase 1.
            out_specs=pl.BlockSpec((tm, C_out), lambda p, i: (p * i, 0)),
            scratch_shapes=[
                pltpu.VMEM((M_pad, C_pad), jnp.float32),   # conv, VMEM-resident
                pltpu.VMEM((1, C_pad), jnp.float32),       # per-channel sum
                pltpu.VMEM((1, C_pad), jnp.float32),       # per-channel sumsq
                pltpu.VMEM((2, C_pad), jnp.float32),       # scale / shift
            ],
            compiler_params=pltpu.CompilerParams(
                dimension_semantics=("arbitrary", "arbitrary"),
                vmem_limit_bytes=vmem_limit,
            ),
        )(cols, w2d, gamma2, beta2)
    else:
        # Two-pass fallback for conv results that do not fit in VMEM.
        conv_buf, stats = pl.pallas_call(
            functools.partial(_gemm_stats_kernel, m_true=float(M)),
            out_shape=(
                jax.ShapeDtypeStruct((M_pad, C_pad), jnp.bfloat16),
                jax.ShapeDtypeStruct((2, C_pad), jnp.float32),
            ),
            grid=(n_tiles,),
            in_specs=[
                pl.BlockSpec((tm, K_pad), lambda i: (i, 0)),
                pl.BlockSpec((K_pad, C_pad), lambda i: (0, 0)),
                pl.BlockSpec((1, C_pad), lambda i: (0, 0)),
                pl.BlockSpec((1, C_pad), lambda i: (0, 0)),
            ],
            out_specs=(
                pl.BlockSpec((tm, C_pad), lambda i: (i, 0)),
                pl.BlockSpec((2, C_pad), lambda i: (0, 0)),
            ),
            scratch_shapes=[
                pltpu.VMEM((1, C_pad), jnp.float32),
                pltpu.VMEM((1, C_pad), jnp.float32),
            ],
            compiler_params=pltpu.CompilerParams(
                dimension_semantics=("arbitrary",),
                vmem_limit_bytes=vmem_limit,
            ),
        )(cols, w2d, gamma2, beta2)

        out = pl.pallas_call(
            functools.partial(_norm_relu_kernel, c_out=C_out),
            out_shape=jax.ShapeDtypeStruct((M_pad, C_out), jnp.float32),
            grid=(n_tiles,),
            in_specs=[
                pl.BlockSpec((tm, C_pad), lambda i: (i, 0)),
                pl.BlockSpec((2, C_pad), lambda i: (0, 0)),
            ],
            out_specs=pl.BlockSpec((tm, C_out), lambda i: (i, 0)),
            compiler_params=pltpu.CompilerParams(
                dimension_semantics=("parallel",),
                vmem_limit_bytes=vmem_limit,
            ),
        )(conv_buf, stats)

    # Strip M padding, [M, C_out] -> NHWC -> NCHW.
    # TODO(synk): skip the transpose entirely if the consumer accepts NHWC.
    out = out[:M].reshape(N, H_out, W_out, C_out).transpose(0, 3, 1, 2)
    return out


def _reference(x_nchw, w_oihw, gamma, beta, *, stride, padding):
    """Pure-JAX reference (conv inputs bf16-rounded like the kernel feeds the MXU)."""
    xb = x_nchw.astype(jnp.bfloat16).astype(jnp.float32)
    wb = w_oihw.astype(jnp.bfloat16).astype(jnp.float32)
    conv = lax.conv_general_dilated(
        xb, wb,
        window_strides=(stride, stride),
        padding=((padding, padding), (padding, padding)),
        dimension_numbers=("NCHW", "OIHW", "NCHW"),
    )
    mean = jnp.mean(conv, axis=(0, 2, 3), keepdims=True)
    var = jnp.mean(jnp.square(conv), axis=(0, 2, 3), keepdims=True) - jnp.square(mean)
    y = (conv - mean) * lax.rsqrt(var + BN_EPS)
    y = y * gamma.reshape(1, -1, 1, 1) + beta.reshape(1, -1, 1, 1)
    return jnp.maximum(y, 0.0)


if __name__ == "__main__":
    # StdConv(C_in=4, C_out=8, kernel_size=3, stride=1, padding=1) on
    # x of shape [2, 4, 16, 16] (NCHW).
    N, C_in, C_out, H, W = 2, 4, 8, 16, 16
    KH = KW = 3
    stride, padding = 1, 1

    key = jax.random.PRNGKey(0)
    kx, kw, kg, kb = jax.random.split(key, 4)
    x = jax.random.normal(kx, (N, C_in, H, W), dtype=jnp.float32)
    w = jax.random.normal(kw, (C_out, C_in, KH, KW), dtype=jnp.float32) * 0.1
    gamma = 1.0 + 0.1 * jax.random.normal(kg, (C_out,), dtype=jnp.float32)
    beta = 0.1 * jax.random.normal(kb, (C_out,), dtype=jnp.float32)

    out = std_conv(x, w, gamma, beta, stride=stride, padding=padding)
    out = jax.block_until_ready(out)

    ref = _reference(x, w, gamma, beta, stride=stride, padding=padding)
    assert out.shape == ref.shape
    max_err = float(jnp.max(jnp.abs(out - ref)))
    assert jnp.allclose(out, ref, atol=2e-3, rtol=2e-3), max_err

    print("KERNEL_OK")
</pallas_src>

<mosaic_0001>
module attributes {stable_mosaic.version = 11 : i64} {
  func.func @_fused_kernel(%arg0: i32, %arg1: i32, %arg2: memref<512x128xbf16, #tpu.memory_space<vmem>>, %arg3: memref<128x128xbf16, #tpu.memory_space<vmem>>, %arg4: memref<1x128xf32, #tpu.memory_space<vmem>>, %arg5: memref<1x128xf32, #tpu.memory_space<vmem>>, %arg6: memref<512x8xf32, #tpu.memory_space<vmem>>, %arg7: memref<512x128xf32, #tpu.memory_space<vmem>>, %arg8: memref<1x128xf32, #tpu.memory_space<vmem>>, %arg9: memref<1x128xf32, #tpu.memory_space<vmem>>, %arg10: memref<2x128xf32, #tpu.memory_space<vmem>>) attributes {dimension_semantics = [#tpu.dimension_semantics<arbitrary>, #tpu.dimension_semantics<arbitrary>], iteration_bounds = array<i64: 2, 1>, scalar_prefetch = 0 : i64, scratch_operands = 4 : i64, tpu.core_type = #tpu.core_type<tc>, window_params = [{transform_indices = @transform_0, window_bounds = array<i64: 512, 128>}, {pipeline_mode = #tpu.pipeline_mode<synchronous>, transform_indices = @transform_1, window_bounds = array<i64: 128, 128>}, {pipeline_mode = #tpu.pipeline_mode<synchronous>, transform_indices = @transform_2, window_bounds = array<i64: 1, 128>}, {pipeline_mode = #tpu.pipeline_mode<synchronous>, transform_indices = @transform_3, window_bounds = array<i64: 1, 128>}, {transform_indices = @transform_4, window_bounds = array<i64: 512, 8>}]} {
    %c0_i32 = arith.constant 0 : i32
    %0 = arith.cmpi eq, %arg0, %c0_i32 : i32
    %c0_i32_0 = arith.constant 0 : i32
    %1 = arith.cmpi eq, %arg1, %c0_i32_0 : i32
    %2 = arith.andi %0, %1 : i1
    %3 = arith.extui %2 : i1 to i32
    %c0_i32_1 = arith.constant 0 : i32
    %4 = arith.cmpi ne, %3, %c0_i32_1 : i32
    scf.if %4 {
      %cst = arith.constant 0.000000e+00 : f32
      %16 = vector.broadcast %cst : f32 to vector<1x128xf32>
      %c0 = arith.constant 0 : index
      %c0_8 = arith.constant 0 : index
      %17 = vector.load %arg8[%c0, %c0_8] : memref<1x128xf32, #tpu.memory_space<vmem>>, vector<1x128xf32>
      tpu.vector_store %arg8[%c0, %c0_8], %16 {strides = array<i32>} : memref<1x128xf32, #tpu.memory_space<vmem>>, vector<1x128xf32>,
      %cst_9 = arith.constant 0.000000e+00 : f32
      %18 = vector.broadcast %cst_9 : f32 to vector<1x128xf32>
      %c0_10 = arith.constant 0 : index
      %c0_11 = arith.constant 0 : index
      %19 = vector.load %arg9[%c0_10, %c0_11] : memref<1x128xf32, #tpu.memory_space<vmem>>, vector<1x128xf32>
      tpu.vector_store %arg9[%c0_10, %c0_11], %18 {strides = array<i32>} : memref<1x128xf32, #tpu.memory_space<vmem>>, vector<1x128xf32>,
    } else {
    }
    %c0_i32_2 = arith.constant 0 : i32
    %5 = arith.cmpi eq, %arg0, %c0_i32_2 : i32
    %6 = arith.extui %5 : i1 to i32
    %c0_i32_3 = arith.constant 0 : i32
    %7 = arith.cmpi ne, %6, %c0_i32_3 : i32
    scf.if %7 {
      %c0 = arith.constant 0 : index
      %c0_8 = arith.constant 0 : index
      %16 = vector.load %arg2[%c0, %c0_8] : memref<512x128xbf16, #tpu.memory_space<vmem>>, vector<512x128xbf16>
      %c0_9 = arith.constant 0 : index
      %c0_10 = arith.constant 0 : index
      %17 = vector.load %arg3[%c0_9, %c0_10] : memref<128x128xbf16, #tpu.memory_space<vmem>>, vector<128x128xbf16>
      %cst = arith.constant dense<0.000000e+00> : vector<512x128xf32>
      %18 = tpu.matmul %16, %17, %cst {dimension_numbers = #tpu.dot_dimension_numbers<[1], [0], [0], [1], [0, 0, 1, 1], [], []>} : vector<512x128xbf16>, vector<128x128xbf16>, vector<512x128xf32> -> vector<512x128xf32>
      %c512_i32 = arith.constant 512 : i32
      %19 = arith.muli %arg1, %c512_i32 : i32
      %20 = tpu.assume_multiple %19, 512 : i32
      %21 = arith.index_cast %20 : i32 to index
      %c0_11 = arith.constant 0 : index
      %22 = vector.load %arg7[%21, %c0_11] : memref<512x128xf32, #tpu.memory_space<vmem>>, vector<512x128xf32>
      tpu.vector_store %arg7[%21, %c0_11], %18 {strides = array<i32>} : memref<512x128xf32, #tpu.memory_space<vmem>>, vector<512x128xf32>,
      %c0_12 = arith.constant 0 : index
      %c0_13 = arith.constant 0 : index
      %23 = vector.load %arg8[%c0_12, %c0_13] : memref<1x128xf32, #tpu.memory_space<vmem>>, vector<1x128xf32>
      %cst_14 = arith.constant dense<0.000000e+00> : vector<128xf32>
      %24 = vector.multi_reduction <add>, %18, %cst_14 [0] : vector<512x128xf32> to vector<128xf32>
      %25 = vector.shape_cast %24 : vector<128xf32> to vector<1x128xf32>
      %26 = arith.addf %23, %25 : vector<1x128xf32>
      %c0_15 = arith.constant 0 : index
      %c0_16 = arith.constant 0 : index
      %27 = vector.load %arg8[%c0_15, %c0_16] : memref<1x128xf32, #tpu.memory_space<vmem>>, vector<1x128xf32>
      tpu.vector_store %arg8[%c0_15, %c0_16], %26 {strides = array<i32>} : memref<1x128xf32, #tpu.memory_space<vmem>>, vector<1x128xf32>,
      %c0_17 = arith.constant 0 : index
      %c0_18 = arith.constant 0 : index
      %28 = vector.load %arg9[%c0_17, %c0_18] : memref<1x128xf32, #tpu.memory_space<vmem>>, vector<1x128xf32>
      %29 = arith.mulf %18, %18 : vector<512x128xf32>
      %cst_19 = arith.constant dense<0.000000e+00> : vector<128xf32>
      %30 = vector.multi_reduction <add>, %29, %cst_19 [0] : vector<512x128xf32> to vector<128xf32>
      %31 = vector.shape_cast %30 : vector<128xf32> to vector<1x128xf32>
      %32 = arith.addf %28, %31 : vector<1x128xf32>
      %c0_20 = arith.constant 0 : index
      %c0_21 = arith.constant 0 : index
      %33 = vector.load %arg9[%c0_20, %c0_21] : memref<1x128xf32, #tpu.memory_space<vmem>>, vector<1x128xf32>
      tpu.vector_store %arg9[%c0_20, %c0_21], %32 {strides = array<i32>} : memref<1x128xf32, #tpu.memory_space<vmem>>, vector<1x128xf32>,
    } else {
    }
    %c0_i32_4 = arith.constant 0 : i32
    %8 = arith.cmpi eq, %arg0, %c0_i32_4 : i32
    %c0_i32_5 = arith.constant 0 : i32
    %9 = arith.cmpi eq, %arg1, %c0_i32_5 : i32
    %10 = arith.andi %8, %9 : i1
    %11 = arith.extui %10 : i1 to i32
    %c0_i32_6 = arith.constant 0 : i32
    %12 = arith.cmpi ne, %11, %c0_i32_6 : i32
    scf.if %12 {
      %c0 = arith.constant 0 : index
      %c0_8 = arith.constant 0 : index
      %16 = vector.load %arg8[%c0, %c0_8] : memref<1x128xf32, #tpu.memory_space<vmem>>, vector<1x128xf32>
      %cst = arith.constant 0.001953125 : f32
      %17 = vector.broadcast %cst : f32 to vector<1x128xf32>
      %18 = arith.mulf %16, %17 : vector<1x128xf32>
      %c0_9 = arith.constant 0 : index
      %c0_10 = arith.constant 0 : index
      %19 = vector.load %arg9[%c0_9, %c0_10] : memref<1x128xf32, #tpu.memory_space<vmem>>, vector<1x128xf32>
      %cst_11 = arith.constant 0.001953125 : f32
      %20 = vector.broadcast %cst_11 : f32 to vector<1x128xf32>
      %21 = arith.mulf %19, %20 : vector<1x128xf32>
      %22 = arith.mulf %18, %18 : vector<1x128xf32>
      %23 = arith.subf %21, %22 : vector<1x128xf32>
      %cst_12 = arith.constant 0.000000e+00 : f32
      %24 = vector.broadcast %cst_12 : f32 to vector<1x128xf32>
      %25 = arith.maximumf %23, %24 : vector<1x128xf32>
      %cst_13 = arith.constant 9.99999974E-6 : f32
      %26 = vector.broadcast %cst_13 : f32 to vector<1x128xf32>
      %27 = arith.addf %25, %26 : vector<1x128xf32>
      %28 = math.rsqrt %27 : vector<1x128xf32>
      %c0_14 = arith.constant 0 : index
      %c0_15 = arith.constant 0 : index
      %29 = vector.load %arg4[%c0_14, %c0_15] : memref<1x128xf32, #tpu.memory_space<vmem>>, vector<1x128xf32>
      %30 = arith.mulf %29, %28 : vector<1x128xf32>
      %c0_16 = arith.constant 0 : index
      %c0_17 = arith.constant 0 : index
      %31 = vector.load %arg10[%c0_16, %c0_17] : memref<2x128xf32, #tpu.memory_space<vmem>>, vector<1x128xf32>
      tpu.vector_store %arg10[%c0_16, %c0_17], %30 {strides = array<i32>} : memref<2x128xf32, #tpu.memory_space<vmem>>, vector<1x128xf32>,
      %c0_18 = arith.constant 0 : index
      %c0_19 = arith.constant 0 : index
      %32 = vector.load %arg5[%c0_18, %c0_19] : memref<1x128xf32, #tpu.memory_space<vmem>>, vector<1x128xf32>
      %33 = arith.mulf %18, %30 : vector<1x128xf32>
      %34 = arith.subf %32, %33 : vector<1x128xf32>
      %c1 = arith.constant 1 : index
      %c0_20 = arith.constant 0 : index
      %35 = vector.load %arg10[%c1, %c0_20] : memref<2x128xf32, #tpu.memory_space<vmem>>, vector<1x128xf32>
      tpu.vector_store %arg10[%c1, %c0_20], %34 {strides = array<i32>} : memref<2x128xf32, #tpu.memory_space<vmem>>, vector<1x128xf32>,
    } else {
    }
    %c1_i32 = arith.constant 1 : i32
    %13 = arith.cmpi eq, %arg0, %c1_i32 : i32
    %14 = arith.extui %13 : i1 to i32
    %c0_i32_7 = arith.constant 0 : i32
    %15 = arith.cmpi ne, %14, %c0_i32_7 : i32
    scf.if %15 {
      %c512_i32 = arith.constant 512 : i32
      %16 = arith.muli %arg1, %c512_i32 : i32
      %17 = tpu.assume_multiple %16, 512 : i32
      %18 = arith.index_cast %17 : i32 to index
      %c0 = arith.constant 0 : index
      %19 = vector.load %arg7[%18, %c0] : memref<512x128xf32, #tpu.memory_space<vmem>>, vector<512x128xf32>
      %c0_8 = arith.constant 0 : index
      %c0_9 = arith.constant 0 : index
      %20 = vector.load %arg10[%c0_8, %c0_9] : memref<2x128xf32, #tpu.memory_space<vmem>>, vector<1x128xf32>
      %21 = vector.broadcast %20 : vector<1x128xf32> to vector<512x128xf32>
      %22 = arith.mulf %19, %21 : vector<512x128xf32>
      %c1 = arith.constant 1 : index
      %c0_10 = arith.constant 0 : index
      %23 = vector.load %arg10[%c1, %c0_10] : memref<2x128xf32, #tpu.memory_space<vmem>>, vector<1x128xf32>
      %24 = vector.broadcast %23 : vector<1x128xf32> to vector<512x128xf32>
      %25 = arith.addf %22, %24 : vector<512x128xf32>
      %cst = arith.constant 0.000000e+00 : f32
      %26 = vector.broadcast %cst : f32 to vector<512x128xf32>
      %27 = arith.maximumf %25, %26 : vector<512x128xf32>
      %28 = vector.extract_strided_slice %27 {offsets = [0, 0], sizes = [512, 8], strides = [1, 1]} : vector<512x128xf32> to vector<512x8xf32>
      %c0_11 = arith.constant 0 : index
      %c0_12 = arith.constant 0 : index
      %29 = vector.load %arg6[%c0_11, %c0_12] : memref<512x8xf32, #tpu.memory_space<vmem>>, vector<512x8xf32>
      tpu.vector_store %arg6[%c0_11, %c0_12], %28 {strides = array<i32>} : memref<512x8xf32, #tpu.memory_space<vmem>>, vector<512x8xf32>,
    } else {
    }
    return
  }
  func.func @transform_0(%arg0: i32, %arg1: i32) -> (i32, i32) {
    %c1_i32 = arith.constant 1 : i32
    %0 = arith.subi %c1_i32, %arg0 : i32
    %1 = arith.muli %0, %arg1 : i32
    %c0_i32 = arith.constant 0 : i32
    %c0_i32_0 = arith.constant 0 : i32
    return %1, %c0_i32 : i32, i32
  }
  func.func @transform_1(%arg0: i32, %arg1: i32) -> (i32, i32) {
    %c0_i32 = arith.constant 0 : i32
    %c0_i32_0 = arith.constant 0 : i32
    %c0_i32_1 = arith.constant 0 : i32
    return %c0_i32, %c0_i32_0 : i32, i32
  }
  func.func @transform_2(%arg0: i32, %arg1: i32) -> (i32, i32) {
    %c0_i32 = arith.constant 0 : i32
    %c0_i32_0 = arith.constant 0 : i32
    %c0_i32_1 = arith.constant 0 : i32
    return %c0_i32, %c0_i32_0 : i32, i32
  }
  func.func @transform_3(%arg0: i32, %arg1: i32) -> (i32, i32) {
    %c0_i32 = arith.constant 0 : i32
    %c0_i32_0 = arith.constant 0 : i32
    %c0_i32_1 = arith.constant 0 : i32
    return %c0_i32, %c0_i32_0 : i32, i32
  }
  func.func @transform_4(%arg0: i32, %arg1: i32) -> (i32, i32) {
    %0 = arith.muli %arg0, %arg1 : i32
    %c0_i32 = arith.constant 0 : i32
    %c0_i32_0 = arith.constant 0 : i32
    return %0, %c0_i32 : i32, i32
  }
}

</mosaic_0001>

<bundles_post_ra>
// kernel: std_conv.1
= control target key start
LH: loop header
LB: loop body
LE: loop exit
PB: predicated region body
PF: predicated region fallthrough
CT: control target
= control target key end

     0   :  { %s1753_s15 = smov 0   ;;  %s1755_s16 = smov 0   ;;  %s2594_s0 = inlined_call_operand.vmem [shape: bf16[512,128], index: 0, kind: input, shape index: {}]   ;;  %s2595_s1 = inlined_call_operand.vmem [shape: bf16[128,128], index: 1, kind: input, shape index: {}]   ;;  %s2596_s2 = inlined_call_operand.vmem [shape: f32[1,128], index: 2, kind: input, shape index: {}]   ;;  %s2597_s3 = inlined_call_operand.vmem [shape: f32[1,128], index: 3, kind: input, shape index: {}]   ;;  %s2598_s4 = inlined_call_operand.vmem [shape: f32[512,8], index: 4, kind: output, shape index: {}]  }
   0x1   :  { %s1757_s17 = smov 0  }
   0x2 LB: > { %s26_s18 = sadd.s32 1, %s1721_s16  ;;  %p1441_p0 = scmp.ge.s32.totalorder %s1725_s17, 1  ;;  %s1725_s17 = sphi %s1757_s17, %s14_s17   ;;  %s1721_s16 = sphi %s1755_s16, %s2600_s16   ;;  %s1717_s15 = sphi %s1753_s15, %s2599_s15  }
   0x3   : > { %p28_p1 = scmp.ge.s32.totalorder %s26_s18, 2  ;;  %p185_p2 = scmp.lt.s32.totalorder %s1725_s17, 3 }
   0x5   : > { %s2602_s18 = smov (%p28_p1, %s26_s18), 0  ;;  %p186_p3 = pnand %p1441_p0, %p185_p2 }
   0x6   : > { %p232_p4 = scmp.eq.s32.totalorder (!%p186_p3), %s1717_s15, 0 }
   0x7   : > { %189 = sbr.rel (%p186_p3) target bundleno = 535 (0x217), region = 36 }
   0xc   : > { %237 = sbr.rel (!%p232_p4) target bundleno = 17 (0x11), region = 40  ;;  %v1727_v0 = vmov (%p232_p4), 0.0  }
   0xd   : > { %238 = vst [vmem:[#allocation3] sm:$0x1] (%p232_p4), %v1727_v0 }
   0xe   : > { %239 = vst [vmem:[#allocation4] sm:$0x1] (%p232_p4), %v1727_v0 }
  0x11 PF: > { %p1443_p5 = scmp.ne.s32.totalorder %s1717_s15, 0 }
  0x13   : > { %242 = sbr.rel (%p1443_p5) target bundleno = 417 (0x1a1), region = 44 }
  0x18   : > { %v1649_v1 = vld [vmem:[%s2595_s1 + $0x38] sm:$0xff]  ;;  %v1648_v2 = vld [vmem:[%s2595_s1 + $0x30] sm:$0xff]  ;;  %v1647_v3 = vld [vmem:[%s2595_s1 + $0x28] sm:$0xff] }
  0x19   : > { %563 = vmatpush.bf16.msra.mxu0 %v1649_v1  ;;  %1650 = vmatpush.bf16.msra.mxu1 %v1649_v1  ;;  %v1646_v4 = vld [vmem:[%s2595_s1 + $0x20] sm:$0xff]  ;;  %v1645_v5 = vld [vmem:[%s2595_s1 + $0x18] sm:$0xff]  ;;  %v1644_v6 = vld [vmem:[%s2595_s1 + $0x10] sm:$0xff] }
  0x1a   : > { %1651 = vmatpush.bf16.msra.mxu2 %v1649_v1  ;;  %1652 = vmatpush.bf16.msra.mxu3 %v1649_v1  ;;  %v1643_v7 = vld [vmem:[%s2595_s1 + $0x8] sm:$0xff]  ;;  %v1642_v8 = vld [vmem:[%s2595_s1] sm:$0xff]  ;;  %v1612_v14 = vld [vmem:[%s2594_s0 + $0x10] sm:$0xff] }
  0x1b   : > { %v1610_v9 = vld [vmem:[%s2594_s0] sm:$0xff]  ;;  %v1611_v11 = vld [vmem:[%s2594_s0 + $0x8] sm:$0xff]  ;;  %v1620_v15 = vld [vmem:[%s2594_s0 + $0x50] sm:$0xff] }
  0x1c   : > { %v1618_v10 = vld [vmem:[%s2594_s0 + $0x40] sm:$0xff]  ;;  %v1619_v12 = vld [vmem:[%s2594_s0 + $0x48] sm:$0xff]  ;;  %v1613_v17 = vld [vmem:[%s2594_s0 + $0x18] sm:$0xff] }
  0x1d   : > { %564 = vmatpush.bf16.msra.mxu0 %v1648_v2  ;;  %1653 = vmatpush.bf16.msra.mxu1 %v1648_v2  ;;  %v1626_v13 = vld [vmem:[%s2594_s0 + $0x80] sm:$0xff]  ;;  %v1627_v16 = vld [vmem:[%s2594_s0 + $0x88] sm:$0xff]  ;;  %v1621_v18 = vld [vmem:[%s2594_s0 + $0x58] sm:$0xff] }
  0x1e   : > { %1654 = vmatpush.bf16.msra.mxu2 %v1648_v2  ;;  %1655 = vmatpush.bf16.msra.mxu3 %v1648_v2  ;;  %v1628_v19 = vld [vmem:[%s2594_s0 + $0x90] sm:$0xff]  ;;  %v1634_v20 = vld [vmem:[%s2594_s0 + $0xc0] sm:$0xff]  ;;  %v1629_v23 = vld [vmem:[%s2594_s0 + $0x98] sm:$0xff] }
  0x1f   : > { %v1614_v21 = vld [vmem:[%s2594_s0 + $0x20] sm:$0xff]  ;;  %v1635_v24 = vld [vmem:[%s2594_s0 + $0xc8] sm:$0xff]  ;;  %v1636_v28 = vld [vmem:[%s2594_s0 + $0xd0] sm:$0xff] }
  0x20   : > { %v1622_v22 = vld [vmem:[%s2594_s0 + $0x60] sm:$0xff]  ;;  %v1615_v25 = vld [vmem:[%s2594_s0 + $0x28] sm:$0xff]  ;;  %v1616_v29 = vld [vmem:[%s2594_s0 + $0x30] sm:$0xff] }
  0x21   : > { %565 = vmatpush.bf16.msra.mxu0 %v1647_v3  ;;  %1656 = vmatpush.bf16.msra.mxu1 %v1647_v3  ;;  %v1623_v26 = vld [vmem:[%s2594_s0 + $0x68] sm:$0xff]  ;;  %v1630_v27 = vld [vmem:[%s2594_s0 + $0xa0] sm:$0xff]  ;;  %v1624_v30 = vld [vmem:[%s2594_s0 + $0x70] sm:$0xff] }
  0x22   : > { %1657 = vmatpush.bf16.msra.mxu2 %v1647_v3  ;;  %1658 = vmatpush.bf16.msra.mxu3 %v1647_v3  ;;  %v1631_v31 = vld [vmem:[%s2594_s0 + $0xa8] sm:$0xff]  ;;  %v1637_v32 = vld [vmem:[%s2594_s0 + $0xd8] sm:$0xff]  ;;  %v1632_v35 = vld [vmem:[%s2594_s0 + $0xb0] sm:$0xff] }
  0x23   : > { %v1617_v33 = vld [vmem:[%s2594_s0 + $0x38] sm:$0xff]  ;;  %v1638_v36 = vld [vmem:[%s2594_s0 + $0xe0] sm:$0xff]  ;;  %v1639_v40 = vld [vmem:[%s2594_s0 + $0xe8] sm:$0xff] }
  0x24   : > { %v1625_v34 = vld [vmem:[%s2594_s0 + $0x78] sm:$0xff]  ;;  %v1640_v52 = vld [vmem:[%s2594_s0 + $0xf0] sm:$0xff] }
  0x25   : > { %566 = vmatpush.bf16.msra.mxu0 %v1646_v4  ;;  %1659 = vmatpush.bf16.msra.mxu1 %v1646_v4  ;;  %v1633_v39 = vld [vmem:[%s2594_s0 + $0xb8] sm:$0xff] }
  0x26   : > { %1660 = vmatpush.bf16.msra.mxu2 %v1646_v4  ;;  %1661 = vmatpush.bf16.msra.mxu3 %v1646_v4  ;;  %v1641_v1 = vld [vmem:[%s2594_s0 + $0xf8] sm:$0xff] }
  0x29   : > { %567 = vmatpush.bf16.msra.mxu0 %v1645_v5  ;;  %1662 = vmatpush.bf16.msra.mxu1 %v1645_v5 }
  0x2a   : > { %1663 = vmatpush.bf16.msra.mxu2 %v1645_v5  ;;  %1664 = vmatpush.bf16.msra.mxu3 %v1645_v5 }
  0x2d   : > { %568 = vmatpush.bf16.msra.mxu0 %v1644_v6  ;;  %1665 = vmatpush.bf16.msra.mxu1 %v1644_v6 }
  0x2e   : > { %1666 = vmatpush.bf16.msra.mxu2 %v1644_v6  ;;  %1667 = vmatpush.bf16.msra.mxu3 %v1644_v6 }
  0x31   : > { %569 = vmatpush.bf16.msra.mxu0 %v1643_v7  ;;  %1668 = vmatpush.bf16.msra.mxu1 %v1643_v7 }
  0x32   : > { %1669 = vmatpush.bf16.msra.mxu2 %v1643_v7  ;;  %1670 = vmatpush.bf16.msra.mxu3 %v1643_v7 }
  0x35   : > { %570 = vmatpush.bf16.msra.mxu0 %v1642_v8  ;;  %1671 = vmatpush.bf16.msra.mxu1 %v1642_v8 }
  0x36   : > { %1672 = vmatpush.bf16.msra.mxu2 %v1642_v8  ;;  %1673 = vmatpush.bf16.msra.mxu3 %v1642_v8 }
  0x38   : > { %571 = vmatmul.bf16.vlgmr.msra.gmra.mxu0 %v1610_v9  ;;  %611 = vmatmul.bf16.vlgmr.msra.gmra.mxu1 %v1618_v10 }
  0x39   : > { %651 = vmatmul.bf16.vlgmr.msra.gmra.mxu2 %v1626_v13  ;;  %691 = vmatmul.bf16.vlgmr.msra.gmra.mxu3 %v1634_v20 }
  0x48   : > { %576 = vmatmul.bf16.gmra.mxu0 %v1611_v11  ;;  %616 = vmatmul.bf16.gmra.mxu1 %v1619_v12 }
  0x49   : > { %656 = vmatmul.bf16.gmra.mxu2 %v1627_v16  ;;  %696 = vmatmul.bf16.gmra.mxu3 %v1635_v24 }
  0x58   : > { %581 = vmatmul.bf16.gmra.mxu0 %v1612_v14  ;;  %621 = vmatmul.bf16.gmra.mxu1 %v1620_v15 }
  0x59   : > { %661 = vmatmul.bf16.gmra.mxu2 %v1628_v19  ;;  %701 = vmatmul.bf16.gmra.mxu3 %v1636_v28 }
  0x68   : > { %586 = vmatmul.bf16.gmra.mxu0 %v1613_v17  ;;  %626 = vmatmul.bf16.gmra.mxu1 %v1621_v18 }
  0x69   : > { %666 = vmatmul.bf16.gmra.mxu2 %v1629_v23  ;;  %706 = vmatmul.bf16.gmra.mxu3 %v1637_v32 }
  0x78   : > { %591 = vmatmul.bf16.gmra.mxu0 %v1614_v21  ;;  %631 = vmatmul.bf16.gmra.mxu1 %v1622_v22 }
  0x79   : > { %671 = vmatmul.bf16.gmra.mxu2 %v1630_v27  ;;  %711 = vmatmul.bf16.gmra.mxu3 %v1638_v36 }
  0x88   : > { %596 = vmatmul.bf16.gmra.mxu0 %v1615_v25  ;;  %636 = vmatmul.bf16.gmra.mxu1 %v1623_v26 }
  0x89   : > { %676 = vmatmul.bf16.gmra.mxu2 %v1631_v31  ;;  %716 = vmatmul.bf16.gmra.mxu3 %v1639_v40 }
  0x98   : > { %601 = vmatmul.bf16.gmra.mxu0 %v1616_v29  ;;  %641 = vmatmul.bf16.gmra.mxu1 %v1624_v30 }
  0x99   : > { %681 = vmatmul.bf16.gmra.mxu2 %v1632_v35  ;;  %721 = vmatmul.bf16.gmra.mxu3 %v1640_v52 }
  0xa8   : > { %606 = vmatmul.bf16.gmra.mxu0 %v1617_v33  ;;  %646 = vmatmul.bf16.gmra.mxu1 %v1625_v34 }
  0xa9   : > { %686 = vmatmul.bf16.gmra.mxu2 %v1633_v39  ;;  %726 = vmatmul.bf16.gmra.mxu3 %v1641_v1 }
  0xb5   : > { %v572_v37 = vpop.f32.mrf.mxu0  ;;  %v1885_v38 = vpop.f32.mrf.mxu1 }
  0xb6   : > { %734 = vst [vmem:[#allocation2 + $0xb0] sm:$0xff] %v572_v37  ;;  %v871_v43 = vmul.f32 %v572_v37, %v572_v37 }
  0xb7   : > { %750 = vst [vmem:[#allocation2 + $0xe0] sm:$0xff] %v1885_v38 }
  0xbc   : > { %v1905_v57 = vpop.f32.mrf.mxu2  ;;  %v1938_v11 = vpop.f32.mrf.mxu3 }
  0xbd   : > { %v574_v41 = vpop.f32.mrf.mxu0  ;;  %v1894_v42 = vpop.f32.mrf.mxu1  ;;  %766 = vst [vmem:[#allocation2 + $0x148] sm:$0xff] %v1905_v57 }
  0xbe   : > { %735 = vst [vmem:[#allocation2 + $0x1b0] sm:$0xff] %v574_v41  ;;  %v799_v44 = vadd.f32 %v574_v41, %v572_v37  ;;  %v872_v45 = vmul.f32 %v574_v41, %v574_v41 }
  0xbf   : > { %751 = vst [vmem:[#allocation2 + $0x188] sm:$0xff] %v1894_v42 }
  0xc0   : > { %v935_v46 = vadd.f32 %v872_v45, %v871_v43  ;;  %782 = vst [vmem:[#allocation2 + $0xb8] sm:$0xff] %v1938_v11 }
  0xc4   : > { %v1913_v63 = vpop.f32.mrf.mxu2  ;;  %v1947_v15 = vpop.f32.mrf.mxu3 }
  0xc5   : > { %v577_v47 = vpop.f32.mrf.mxu0  ;;  %v1897_v48 = vpop.f32.mrf.mxu1  ;;  %767 = vst [vmem:[#allocation2 + $0x1d0] sm:$0xff] %v1913_v63 }
  0xc6   : > { %736 = vst [vmem:[#allocation2 + $0xd8] sm:$0xff] %v577_v47  ;;  %v800_v49 = vadd.f32 %v799_v44, %v577_v47  ;;  %v873_v50 = vmul.f32 %v577_v47, %v577_v47 }
  0xc7   : > { %752 = vst [vmem:[#allocation2 + $0x138] sm:$0xff] %v1897_v48 }
  0xc8   : > { %v936_v51 = vadd.f32 %v935_v46, %v873_v50  ;;  %783 = vst [vmem:[#allocation2 + $0x88] sm:$0xff] %v1947_v15 }
  0xcc   : > { %v1924_v4 = vpop.f32.mrf.mxu2  ;;  %v1956_v19 = vpop.f32.mrf.mxu3 }
  0xcd   : > { %v579_v53 = vpop.f32.mrf.mxu0  ;;  %v1903_v54 = vpop.f32.mrf.mxu1  ;;  %768 = vst [vmem:[#allocation2 + $0x100] sm:$0xff] %v1924_v4 }
  0xce   : > { %737 = vst [vmem:[#allocation2 + $0x18] sm:$0xff] %v579_v53  ;;  %v801_v55 = vadd.f32 %v800_v49, %v579_v53  ;;  %v874_v56 = vmul.f32 %v579_v53, %v579_v53 }
  0xcf   : > { %753 = vst [vmem:[#allocation2 + $0x140] sm:$0xff] %v1903_v54 }
  0xd0   : > { %v937_v58 = vadd.f32 %v936_v51, %v874_v56  ;;  %784 = vst [vmem:[#allocation2 + $0xa8] sm:$0xff] %v1956_v19 }
  0xd4   : > { %v1930_v7 = vpop.f32.mrf.mxu2  ;;  %v1965_v23 = vpop.f32.mrf.mxu3 }
  0xd5   : > { %v582_v59 = vpop.f32.mrf.mxu0  ;;  %v1909_v60 = vpop.f32.mrf.mxu1  ;;  %769 = vst [vmem:[#allocation2 + $0xc8] sm:$0xff] %v1930_v7 }
  0xd6   : > { %738 = vst [vmem:[#allocation2 + $0x50] sm:$0xff] %v582_v59  ;;  %v1911_v61 = vadd.f32 %v801_v55, %v582_v59  ;;  %v875_v62 = vmul.f32 %v582_v59, %v582_v59 }
  0xd7   : > { %754 = vst [vmem:[#allocation2 + $0x80] sm:$0xff] %v1909_v60 }
  0xd8   : > { %v1916_v0 = vadd.f32 %v937_v58, %v875_v62  ;;  %785 = vst [vmem:[#allocation2 + $0x1c8] sm:$0xff] %v1965_v23 }
  0xdc   : > { %v1936_v10 = vpop.f32.mrf.mxu2  ;;  %v1974_v27 = vpop.f32.mrf.mxu3 }
  0xdd   : > { %v584_v2 = vpop.f32.mrf.mxu0  ;;  %v1922_v3 = vpop.f32.mrf.mxu1  ;;  %770 = vst [vmem:[#allocation2 + $0x40] sm:$0xff] %v1936_v10 }
  0xde   : > { %739 = vst [vmem:[#allocation2 + $0x168] sm:$0xff] %v584_v2  ;;  %v876_v32 = vmul.f32 %v584_v2, %v584_v2  ;;  %v803_v33 = vadd.f32 %v1911_v61, %v584_v2 }
  0xdf   : > { %755 = vst [vmem:[#allocation2 + $0x1a8] sm:$0xff] %v1922_v3 }
  0xe0   : > { %786 = vst [vmem:[#allocation2 + $0x170] sm:$0xff] %v1974_v27  ;;  %v939_v35 = vadd.f32 %v1916_v0, %v876_v32 }
  0xe4   : > { %v1945_v14 = vpop.f32.mrf.mxu2  ;;  %v1983_v31 = vpop.f32.mrf.mxu3 }
  0xe5   : > { %v587_v5 = vpop.f32.mrf.mxu0  ;;  %v1928_v6 = vpop.f32.mrf.mxu1  ;;  %771 = vst [vmem:[#allocation2 + $0x1f8] sm:$0xff] %v1945_v14 }
  0xe6   : > { %740 = vst [vmem:[#allocation2 + $0x130] sm:$0xff] %v587_v5  ;;  %v877_v34 = vmul.f32 %v587_v5, %v587_v5  ;;  %v804_v36 = vadd.f32 %v803_v33, %v587_v5 }
  0xe7   : > { %756 = vst [vmem:[#allocation2 + $0x1b8] sm:$0xff] %v1928_v6 }
  0xe8   : > { %787 = vst [vmem:[#allocation2 + $0x178] sm:$0xff] %v1983_v31  ;;  %v940_v41 = vadd.f32 %v939_v35, %v877_v34 }
  0xec   : > { %v1954_v18 = vpop.f32.mrf.mxu2  ;;  %v1994_v46 = vpop.f32.mrf.mxu3 }
  0xed   : > { %v589_v8 = vpop.f32.mrf.mxu0  ;;  %v1934_v9 = vpop.f32.mrf.mxu1  ;;  %772 = vst [vmem:[#allocation2 + $0x20] sm:$0xff] %v1954_v18 }
  0xee   : > { %741 = vst [vmem:[#allocation2 + $0x48] sm:$0xff] %v589_v8  ;;  %v878_v37 = vmul.f32 %v589_v8, %v589_v8  ;;  %v805_v43 = vadd.f32 %v804_v36, %v589_v8 }
  0xef   : > { %757 = vst [vmem:[#allocation2 + $0x28] sm:$0xff] %v1934_v9 }
  0xf0   : > { %v941_v47 = vadd.f32 %v940_v41, %v878_v37  ;;  %788 = vst [vmem:[#allocation2 + $0x68] sm:$0xff] %v1994_v46 }
  0xf4   : > { %v1963_v22 = vpop.f32.mrf.mxu2  ;;  %v2003_v5 = vpop.f32.mrf.mxu3 }
  0xf5   : > { %v592_v12 = vpop.f32.mrf.mxu0  ;;  %v1943_v13 = vpop.f32.mrf.mxu1  ;;  %773 = vst [vmem:[#allocation2 + $0x128] sm:$0xff] %v1963_v22 }
  0xf6   : > { %742 = vst [vmem:[#allocation2 + $0x180] sm:$0xff] %v592_v12  ;;  %v879_v44 = vmul.f32 %v592_v12, %v592_v12  ;;  %v806_v49 = vadd.f32 %v805_v43, %v592_v12 }
  0xf7   : > { %758 = vst [vmem:[#allocation2 + $0x1e8] sm:$0xff] %v1943_v13 }
  0xf8   : > { %v942_v51 = vadd.f32 %v941_v47, %v879_v44  ;;  %789 = vst [vmem:[#allocation2 + $0x190] sm:$0xff] %v2003_v5  ;;  %v887_v47 = vmul.f32 %v1885_v38, %v1885_v38 }
  0xfc   : > { %v1972_v26 = vpop.f32.mrf.mxu2 }
  0xfd   : > { %v594_v16 = vpop.f32.mrf.mxu0  ;;  %v1952_v17 = vpop.f32.mrf.mxu1  ;;  %774 = vst [vmem:[#allocation2 + $0x1a0] sm:$0xff] %v1972_v26 }
  0xfe   : > { %743 = vst [vmem:[#allocation2 + $0x110] sm:$0xff] %v594_v16  ;;  %v880_v50 = vmul.f32 %v594_v16, %v594_v16  ;;  %v807_v52 = vadd.f32 %v806_v49, %v594_v16 }
  0xff   : > { %759 = vst [vmem:[#allocation2 + $0xf8] sm:$0xff] %v1952_v17 }
 0x100   : > { %v943_v55 = vadd.f32 %v942_v51, %v880_v50  ;;  %v888_v50 = vmul.f32 %v1894_v42, %v1894_v42 }
 0x104   : > { %v1981_v30 = vpop.f32.mrf.mxu2 }
 0x105   : > { %v597_v20 = vpop.f32.mrf.mxu0  ;;  %v1961_v21 = vpop.f32.mrf.mxu1  ;;  %775 = vst [vmem:[#allocation2 + $0x1f0] sm:$0xff] %v1981_v30 }
 0x106   : > { %744 = vst [vmem:[#allocation2 + $0x118] sm:$0xff] %v597_v20  ;;  %v881_v53 = vmul.f32 %v597_v20, %v597_v20  ;;  %v808_v56 = vadd.f32 %v807_v52, %v597_v20 }
 0x107   : > { %760 = vst [vmem:[#allocation2 + $0x160] sm:$0xff] %v1961_v21 }
 0x108   : > { %v944_v62 = vadd.f32 %v943_v55, %v881_v53  ;;  %v889_v53 = vmul.f32 %v1897_v48, %v1897_v48 }
 0x10c   : > { %v1992_v45 = vpop.f32.mrf.mxu2 }
 0x10d   : > { %v599_v24 = vpop.f32.mrf.mxu0  ;;  %v1970_v25 = vpop.f32.mrf.mxu1  ;;  %776 = vst [vmem:[#allocation2 + $0xe8] sm:$0xff] %v1992_v45 }
 0x10e   : > { %745 = vst [vmem:[#allocation2 + $0x98] sm:$0xff] %v599_v24  ;;  %v882_v58 = vmul.f32 %v599_v24, %v599_v24  ;;  %v809_v0 = vadd.f32 %v808_v56, %v599_v24 }
 0x10f   : > { %761 = vst [vmem:[#allocation2 + $0x30] sm:$0xff] %v1970_v25 }
 0x110   : > { %v945_v8 = vadd.f32 %v944_v62, %v882_v58 }
 0x114   : > { %v2001_v2 = vpop.f32.mrf.mxu2 }
 0x115   : > { %v602_v28 = vpop.f32.mrf.mxu0  ;;  %v1979_v29 = vpop.f32.mrf.mxu1  ;;  %777 = vst [vmem:[#allocation2 + $0x78] sm:$0xff] %v2001_v2 }
 0x116   : > { %746 = vst [vmem:[#allocation2 + $0x120] sm:$0xff] %v602_v28  ;;  %v883_v1 = vmul.f32 %v602_v28, %v602_v28  ;;  %v810_v12 = vadd.f32 %v809_v0, %v602_v28  ;;  %v2012_v28 = vpop.f32.mrf.mxu3 }
 0x117   : > { %762 = vst [vmem:[#allocation2 + $0x1e0] sm:$0xff] %v1979_v29 }
 0x118   : > { %v946_v20 = vadd.f32 %v945_v8, %v883_v1  ;;  %790 = vst [vmem:[#allocation2 + $0x198] sm:$0xff] %v2012_v28 }
 0x11c   : > { %v2010_v44 = vpop.f32.mrf.mxu2 }
 0x11d   : > { %v604_v39 = vpop.f32.mrf.mxu0  ;;  %v1990_v40 = vpop.f32.mrf.mxu1  ;;  %778 = vst [vmem:[#allocation2 + $0x70] sm:$0xff] %v2010_v44 }
 0x11e   : > { %747 = vst [vmem:[#allocation2 + $0x150] sm:$0xff] %v604_v39  ;;  %v884_v16 = vmul.f32 %v604_v39, %v604_v39  ;;  %v811_v32 = vadd.f32 %v810_v12, %v604_v39  ;;  %v2031_v0 = vpop.f32.mrf.mxu3 }
 0x11f   : > { %763 = vst [vmem:[#allocation2] sm:$0xff] %v1990_v40 }
 0x120   : > { %v947_v34 = vadd.f32 %v946_v20, %v884_v16  ;;  %791 = vst [vmem:[#allocation2 + $0x38] sm:$0xff] %v2031_v0  ;;  %v893_v16 = vmul.f32 %v1928_v6, %v1928_v6 }
 0x124   : > { %v2029_v62 = vpop.f32.mrf.mxu2 }
 0x125   : > { %v607_v59 = vpop.f32.mrf.mxu0  ;;  %v1999_v61 = vpop.f32.mrf.mxu1  ;;  %779 = vst [vmem:[#allocation2 + $0x90] sm:$0xff] %v2029_v62 }
 0x126   : > { %748 = vst [vmem:[#allocation2 + $0x108] sm:$0xff] %v607_v59  ;;  %v885_v33 = vmul.f32 %v607_v59, %v607_v59  ;;  %v812_v24 = vadd.f32 %v811_v32, %v607_v59 }
 0x127   : > { %764 = vst [vmem:[#allocation2 + $0xf0] sm:$0xff] %v1999_v61 }
 0x128   : > { %v948_v37 = vadd.f32 %v947_v34, %v885_v33  ;;  %v894_v33 = vmul.f32 %v1934_v9, %v1934_v9 }
 0x12d   : > { %v609_v35 = vpop.f32.mrf.mxu0  ;;  %v2008_v36 = vpop.f32.mrf.mxu1 }
 0x12e   : > { %749 = vst [vmem:[#allocation2 + $0x60] sm:$0xff] %v609_v35  ;;  %v813_v41 = vadd.f32 %v812_v24, %v609_v35  ;;  %v886_v43 = vmul.f32 %v609_v35, %v609_v35  ;;  %v2047_v24 = vpop.f32.mrf.mxu2  ;;  %v2049_v35 = vpop.f32.mrf.mxu3 }
 0x12f   : > { %765 = vst [vmem:[#allocation2 + $0x8] sm:$0xff] %v2008_v36 }
 0x130   : > { %v814_v39 = vadd.f32 %v813_v41, %v1885_v38  ;;  %v949_v49 = vadd.f32 %v948_v37, %v886_v43  ;;  %v890_v38 = vmul.f32 %v1903_v54, %v1903_v54  ;;  %780 = vst [vmem:[#allocation2 + $0x1d8] sm:$0xff] %v2047_v24 }
 0x131   : > { %792 = vst [vmem:[#allocation2 + $0xc0] sm:$0xff] %v2049_v35 }
 0x132   : > { %v815_v51 = vadd.f32 %v814_v39, %v1894_v42  ;;  %v950_v52 = vadd.f32 %v949_v49, %v887_v47  ;;  %v891_v42 = vmul.f32 %v1909_v60, %v1909_v60  ;;  %v897_v47 = vmul.f32 %v1961_v21, %v1961_v21 }
 0x134   : > { %v816_v55 = vadd.f32 %v815_v51, %v1897_v48  ;;  %v951_v56 = vadd.f32 %v950_v52, %v888_v50  ;;  %v892_v48 = vmul.f32 %v1922_v3, %v1922_v3  ;;  %v898_v50 = vmul.f32 %v1970_v25, %v1970_v25 }
 0x136   : > { %v817_v58 = vadd.f32 %v816_v55, %v1903_v54  ;;  %v952_v59 = vadd.f32 %v951_v56, %v889_v53  ;;  %v2065_v52 = vpop.f32.mrf.mxu2  ;;  %v2067_v53 = vpop.f32.mrf.mxu3  ;;  %v899_v55 = vmul.f32 %v1979_v29, %v1979_v29 }
 0x137   : > { %781 = vst [vmem:[#allocation2 + $0xd0] sm:$0xff] %v2065_v52 }
 0x138   : > { %v818_v1 = vadd.f32 %v817_v58, %v1909_v60  ;;  %v953_v8 = vadd.f32 %v952_v59, %v890_v38  ;;  %793 = vst [vmem:[#allocation2 + $0x1c0] sm:$0xff] %v2067_v53 }
 0x13a   : > { %v819_v54 = vadd.f32 %v818_v1, %v1922_v3  ;;  %v954_v12 = vadd.f32 %v953_v8, %v891_v42  ;;  %v895_v3 = vmul.f32 %v1943_v13, %v1943_v13  ;;  %v901_v42 = vmul.f32 %v1999_v61, %v1999_v61 }
 0x13c   : > { %v955_v20 = vadd.f32 %v954_v12, %v892_v48  ;;  %v820_v32 = vadd.f32 %v819_v54, %v1928_v6  ;;  %v896_v6 = vmul.f32 %v1952_v17, %v1952_v17  ;;  %v903_v54 = vmul.f32 %v1905_v57, %v1905_v57 }
 0x13e   : > { %v821_v60 = vadd.f32 %v820_v32, %v1934_v9  ;;  %v956_v34 = vadd.f32 %v955_v20, %v893_v16  ;;  %v2083_v48 = vpop.f32.mrf.mxu3  ;;  %v904_v16 = vmul.f32 %v1913_v63, %v1913_v63  ;;  %v905_v32 = vmul.f32 %v1924_v4, %v1924_v4 }
 0x13f   : > { %794 = vst [vmem:[#allocation2 + $0x158] sm:$0xff] %v2083_v48 }
 0x140   : > { %v822_v37 = vadd.f32 %v821_v60, %v1943_v13  ;;  %v957_v41 = vadd.f32 %v956_v34, %v894_v33  ;;  %v906_v60 = vmul.f32 %v1930_v7, %v1930_v7 }
 0x142   : > { %v823_v9 = vadd.f32 %v822_v37, %v1952_v17  ;;  %v958_v43 = vadd.f32 %v957_v41, %v895_v3 }
 0x144   : > { %v824_v39 = vadd.f32 %v823_v9, %v1961_v21  ;;  %v959_v49 = vadd.f32 %v958_v43, %v896_v6 }
 0x146   : > { %v825_v13 = vadd.f32 %v824_v39, %v1970_v25  ;;  %v960_v51 = vadd.f32 %v959_v49, %v897_v47  ;;  %v900_v25 = vmul.f32 %v1990_v40, %v1990_v40  ;;  %v910_v39 = vmul.f32 %v1963_v22, %v1963_v22 }
 0x148   : > { %v826_v17 = vadd.f32 %v825_v13, %v1979_v29  ;;  %v961_v56 = vadd.f32 %v960_v51, %v898_v50  ;;  %v902_v29 = vmul.f32 %v2008_v36, %v2008_v36 }
 0x14a   : > { %v962_v21 = vadd.f32 %v961_v56, %v899_v55  ;;  %v827_v38 = vadd.f32 %v826_v17, %v1990_v40  ;;  %v912_v17 = vmul.f32 %v1981_v30, %v1981_v30 }
 0x14c   : > { %v963_v58 = vadd.f32 %v962_v21, %v900_v25  ;;  %v828_v59 = vadd.f32 %v827_v38, %v1999_v61  ;;  %v914_v25 = vmul.f32 %v2001_v2, %v2001_v2 }
 0x14e   : > { %v964_v1 = vadd.f32 %v963_v58, %v901_v42  ;;  %v829_v8 = vadd.f32 %v828_v59, %v2008_v36 }
 0x150   : > { %v830_v40 = vadd.f32 %v829_v8, %v1905_v57  ;;  %v965_v12 = vadd.f32 %v964_v1, %v902_v29  ;;  %v2098_v57 = vpop.f32.mrf.mxu3 }
 0x151   : > { %795 = vst [vmem:[#allocation2 + $0x10] sm:$0xff] %v2098_v57 }
 0x152   : > { %v831_v61 = vadd.f32 %v830_v40, %v1913_v63  ;;  %v966_v20 = vadd.f32 %v965_v12, %v903_v54  ;;  %v907_v63 = vmul.f32 %v1936_v10, %v1936_v10 }
 0x154   : > { %v832_v36 = vadd.f32 %v831_v61, %v1924_v4  ;;  %v967_v33 = vadd.f32 %v966_v20, %v904_v16  ;;  %v908_v4 = vmul.f32 %v1945_v14, %v1945_v14  ;;  %v918_v16 = vmul.f32 %v2065_v52, %v2065_v52 }
 0x156   : > { %v833_v34 = vadd.f32 %v832_v36, %v1930_v7  ;;  %v968_v3 = vadd.f32 %v967_v33, %v905_v32  ;;  %v909_v7 = vmul.f32 %v1954_v18, %v1954_v18 }
 0x158   : > { %v834_v37 = vadd.f32 %v833_v34, %v1936_v10  ;;  %v969_v41 = vadd.f32 %v968_v3, %v906_v60  ;;  %v2113_v10 = vpop.f32.mrf.mxu3 }
 0x159   : > { %796 = vst [vmem:[#allocation2 + $0x58] sm:$0xff] %v2113_v10 }
 0x15a   : > { %v835_v6 = vadd.f32 %v834_v37, %v1945_v14  ;;  %v970_v9 = vadd.f32 %v969_v41, %v907_v63  ;;  %v911_v14 = vmul.f32 %v1972_v26, %v1972_v26 }
 0x15c   : > { %v971_v43 = vadd.f32 %v970_v9, %v908_v4  ;;  %v836_v47 = vadd.f32 %v835_v6, %v1954_v18 }
 0x15e   : > { %v837_v49 = vadd.f32 %v836_v47, %v1963_v22  ;;  %v972_v50 = vadd.f32 %v971_v43, %v909_v7  ;;  %v913_v22 = vmul.f32 %v1992_v45, %v1992_v45 }
 0x160   : > { %v838_v13 = vadd.f32 %v837_v49, %v1972_v26  ;;  %v973_v51 = vadd.f32 %v972_v50, %v910_v39  ;;  %v729_v26 = vpop.f32.mrf.mxu3 }
 0x161   : > { %797 = vst [vmem:[#allocation2 + $0xa0] sm:$0xff] %v729_v26 }
 0x162   : > { %v839_v18 = vadd.f32 %v838_v13, %v1981_v30  ;;  %v974_v55 = vadd.f32 %v973_v51, %v911_v14  ;;  %v915_v30 = vmul.f32 %v2010_v44, %v2010_v44  ;;  %v930_v51 = vmul.f32 %v2067_v53, %v2067_v53 }
 0x164   : > { %v840_v56 = vadd.f32 %v839_v18, %v1992_v45  ;;  %v975_v21 = vadd.f32 %v974_v55, %v912_v17  ;;  %v916_v45 = vmul.f32 %v2029_v62, %v2029_v62  ;;  %v931_v55 = vmul.f32 %v2083_v48, %v2083_v48 }
 0x166   : > { %v841_v38 = vadd.f32 %v840_v56, %v2001_v2  ;;  %v976_v58 = vadd.f32 %v975_v21, %v913_v22  ;;  %v917_v2 = vmul.f32 %v2047_v24, %v2047_v24  ;;  %v932_v56 = vmul.f32 %v2098_v57, %v2098_v57 }
 0x168   : > { %v977_v59 = vadd.f32 %v976_v58, %v914_v25  ;;  %v842_v42 = vadd.f32 %v841_v38, %v2010_v44  ;;  %v919_v44 = vmul.f32 %v1938_v11, %v1938_v11  ;;  %v933_v38 = vmul.f32 %v2113_v10, %v2113_v10 }
 0x169   : > { %v934_v58 = vmul.f32 %v729_v26, %v729_v26 }
 0x16a   : > { %v978_v1 = vadd.f32 %v977_v59, %v915_v30  ;;  %v843_v8 = vadd.f32 %v842_v42, %v2029_v62  ;;  %v920_v62 = vmul.f32 %v1947_v15, %v1947_v15 }
 0x16c   : > { %v979_v29 = vadd.f32 %v978_v1, %v916_v45  ;;  %v844_v54 = vadd.f32 %v843_v8, %v2047_v24  ;;  %v921_v24 = vmul.f32 %v1956_v19, %v1956_v19 }
 0x16e   : > { %v980_v40 = vadd.f32 %v979_v29, %v917_v2  ;;  %v845_v12 = vadd.f32 %v844_v54, %v2065_v52  ;;  %v922_v52 = vmul.f32 %v1965_v23, %v1965_v23 }
 0x170   : > { %v846_v61 = vadd.f32 %v845_v12, %v1938_v11  ;;  %v981_v20 = vadd.f32 %v980_v40, %v918_v16  ;;  %v923_v11 = vmul.f32 %v1974_v27, %v1974_v27  ;;  %v870_v16 = vld [vmem:[#allocation4] sm:$0x1] }
 0x172   : > { %v847_v32 = vadd.f32 %v846_v61, %v1947_v15  ;;  %v982_v36 = vadd.f32 %v981_v20, %v919_v44  ;;  %v924_v15 = vmul.f32 %v1983_v31, %v1983_v31 }
 0x174   : > { %v848_v33 = vadd.f32 %v847_v32, %v1956_v19  ;;  %v983_v60 = vadd.f32 %v982_v36, %v920_v62  ;;  %v925_v19 = vmul.f32 %v1994_v46, %v1994_v46 }
 0x176   : > { %v849_v34 = vadd.f32 %v848_v33, %v1965_v23  ;;  %v984_v3 = vadd.f32 %v983_v60, %v921_v24  ;;  %v926_v23 = vmul.f32 %v2003_v5, %v2003_v5 }
 0x178   : > { %v850_v63 = vadd.f32 %v849_v34, %v1974_v27  ;;  %v985_v37 = vadd.f32 %v984_v3, %v922_v52  ;;  %v927_v27 = vmul.f32 %v2012_v28, %v2012_v28 }
 0x17a   : > { %v851_v41 = vadd.f32 %v850_v63, %v1983_v31  ;;  %v986_v4 = vadd.f32 %v985_v37, %v923_v11  ;;  %v928_v31 = vmul.f32 %v2031_v0, %v2031_v0 }
 0x17c   : > { %v987_v6 = vadd.f32 %v986_v4, %v924_v15  ;;  %v852_v9 = vadd.f32 %v851_v41, %v1994_v46  ;;  %v929_v46 = vmul.f32 %v2049_v35, %v2049_v35 }
 0x17e   : > { %v853_v7 = vadd.f32 %v852_v9, %v2003_v5  ;;  %v988_v43 = vadd.f32 %v987_v6, %v925_v19 }
 0x180   : > { %v854_v47 = vadd.f32 %v853_v7, %v2012_v28  ;;  %v989_v39 = vadd.f32 %v988_v43, %v926_v23 }
 0x182   : > { %v855_v49 = vadd.f32 %v854_v47, %v2031_v0  ;;  %v990_v50 = vadd.f32 %v989_v39, %v927_v27 }
 0x184   : > { %v856_v14 = vadd.f32 %v855_v49, %v2049_v35  ;;  %v991_v13 = vadd.f32 %v990_v50, %v928_v31 }
 0x186   : > { %v857_v5 = vadd.f32 %v856_v14, %v2067_v53  ;;  %v992_v17 = vadd.f32 %v991_v13, %v929_v46 }
 0x188   : > { %v993_v28 = vadd.f32 %v992_v17, %v930_v51  ;;  %v858_v18 = vadd.f32 %v857_v5, %v2083_v48 }
 0x18a   : > { %v994_v0 = vadd.f32 %v993_v28, %v931_v55  ;;  %v859_v22 = vadd.f32 %v858_v18, %v2098_v57  ;;  %v798_v57 = vld [vmem:[#allocation3] sm:$0x1] }
 0x18c   : > { %v995_v35 = vadd.f32 %v994_v0, %v932_v56  ;;  %v860_v21 = vadd.f32 %v859_v22, %v2113_v10 }
 0x18e   : > { %v996_v53 = vadd.f32 %v995_v35, %v933_v38  ;;  %v861_v25 = vadd.f32 %v860_v21, %v729_v26 }
 0x190   : > { %v862_v59 = vrot.slane %v861_v25, 4  ;;  %v997_v42 = vadd.f32 %v996_v53, %v934_v58 }
 0x192   : > { %v863_v30 = vadd.f32 %v862_v59, %v861_v25  ;;  %v998_v1 = vrot.slane %v997_v42, 4 }
 0x194   : > { %v864_v48 = vrot.slane %v863_v30, 2  ;;  %v999_v8 = vadd.f32 %v998_v1, %v997_v42 }
 0x196   : > { %v865_v45 = vadd.f32 %v864_v48, %v863_v30  ;;  %v1000_v29 = vrot.slane %v999_v8, 2 }
 0x198   : > { %v866_v54 = vrot.slane %v865_v45, 1  ;;  %v1001_v2 = vadd.f32 %v1000_v29, %v999_v8 }
 0x19a   : > { %v867_v40 = vadd.f32 %v866_v54, %v865_v45  ;;  %v1002_v12 = vrot.slane %v1001_v2, 1 }
 0x19c   : > { %v868_v44 = vadd.f32 %v867_v40, %v798_v57  ;;  %v1003_v61 = vadd.f32 %v1002_v12, %v1001_v2 }
 0x19e   : > { %869 = vst [vmem:[#allocation3] sm:$0x1] %v868_v44  ;;  %v1004_v10 = vadd.f32 %v1003_v61, %v870_v16 }
 0x1a0   : > { %1005 = vst [vmem:[#allocation4] sm:$0x1] %v1004_v10 }
 0x1a1 PF: > { %1007 = sbr.rel (!%p232_p4) target bundleno = 457 (0x1c9), region = 48  ;;  %v1026_v15 = vld [vmem:[%s2596_s2] sm:$0x1] (%p232_p4) }
 0x1a2   : > { %v1029_v19 = vld [vmem:[%s2597_s3] sm:$0x1] (%p232_p4) }
 0x1a5   : > { %v1008_v26 = vld [vmem:[#allocation3] sm:$0x1] (%p232_p4) }
 0x1a6   : > { %v1009_v62 = vmul.f32 0.001953125, %v1008_v26 }
 0x1a7   : > { %v1010_v20 = vld [vmem:[#allocation4] sm:$0x1] }
 0x1a8   : > { %v1011_v32 = vmul.f32 0.001953125, %v1010_v20  ;;  %v1012_v36 = vmul.f32 %v1009_v62, %v1009_v62 }
 0x1aa   : > { %v1013_v24 = vsub.f32 %v1011_v32, %v1012_v36 }
 0x1ac   : > { %v1014_v33 = vmax.f32 %v1013_v24, 0.0 }
 0x1ae   : > { %v1015_v60 = vadd.f32 1e-05, %v1014_v33 }
 0x1b0   : > { %1699 = vrsqrt.f32 %v1015_v60  ;;  %vm1022_vm0 = vweird.f32 %v1015_v60 }
 0x1b6   : > { %v1700_v52 = vpop.eup %1699 }
 0x1b7   : > { %v1017_v34 = vmul.f32 %v1700_v52, %v1015_v60  ;;  %vm1023_vm1 = vweird.f32 %v1700_v52 }
 0x1b8   : > { %vm1024_vm2 = vmor %vm1022_vm0, %vm1023_vm1 }
 0x1b9   : > { %v1018_v3 = vmul.f32 %v1700_v52, %v1017_v34 }
 0x1bb   : > { %v1019_v11 = vmul.f32 0.5, %v1018_v3 }
 0x1bd   : > { %v1020_v63 = vsub.f32 1.5, %v1019_v11 }
 0x1bf   : > { %v1021_v37 = vmul.f32 %v1700_v52, %v1020_v63 }
 0x1c1   : > { %v1025_v41 = vsel %vm1024_vm2, %v1700_v52, %v1021_v37 }
 0x1c2   : > { %v1027_v4 = vmul.f32 %v1026_v15, %v1025_v41 }
 0x1c4   : > { %1028 = vst [vmem:[#allocation5] sm:$0x1] %v1027_v4  ;;  %v1030_v6 = vmul.f32 %v1027_v4, %v1009_v62 }
 0x1c6   : > { %v1031_v9 = vsub.f32 %v1029_v19, %v1030_v6 }
 0x1c8   : > { %1032 = vst [vmem:[#allocation5 + $0x1] sm:$0x1] %v1031_v9 }
 0x1c9 PF: > { %p1604_p6 = scmp.ne.s32.totalorder %s1717_s15, 1 }
 0x1cb   : > { %1036 = sbr.rel (%p1604_p6) target bundleno = 535 (0x217), region = 52 }
 0x1d0   : > { %v1039_v23 = vld [vmem:[#allocation2 + $0xb0] sm:$0xff]  ;;  %v2194_v7 = vld [vmem:[#allocation5] ss:$0 sm:$0xff]  ;;  %v2196_v43 = vld [vmem:[#allocation5 + $0x1] ss:$0 sm:$0xff]  ;;  %vm1299_vm3 = vcmask 64512  }
 0x1d1   : > { %v1040_v27 = vld [vmem:[#allocation2 + $0x1b0] sm:$0xff]  ;;  %v1105_v47 = vmul.f32 %v2194_v7, %v1039_v23  ;;  %v1041_v31 = vld [vmem:[#allocation2 + $0xd8] sm:$0xff]  ;;  %v1044_v5 = vld [vmem:[#allocation2 + $0x168] sm:$0xff] }
 0x1d2   : > { %v1106_v39 = vmul.f32 %v2194_v7, %v1040_v27  ;;  %v1042_v49 = vld [vmem:[#allocation2 + $0x18] sm:$0xff]  ;;  %v1043_v50 = vld [vmem:[#allocation2 + $0x50] sm:$0xff]  ;;  %v1107_v46 = vmul.f32 %v2194_v7, %v1041_v31  ;;  %v1046_v17 = vld [vmem:[#allocation2 + $0x48] sm:$0xff]  ;;  %v1110_v55 = vmul.f32 %v2194_v7, %v1044_v5 }
 0x1d3   : > { %v1108_v14 = vmul.f32 %v2194_v7, %v1042_v49  ;;  %v1109_v13 = vmul.f32 %v2194_v7, %v1043_v50  ;;  %v1045_v51 = vld [vmem:[#allocation2 + $0x130] sm:$0xff]  ;;  %v1171_v28 = vadd.f32 %v2196_v43, %v1105_v47  ;;  %v1112_v21 = vmul.f32 %v2194_v7, %v1046_v17  ;;  %v1047_v38 = vld [vmem:[#allocation2 + $0x180] sm:$0xff]  ;;  %v1049_v30 = vld [vmem:[#allocation2 + $0x118] sm:$0xff] }
 0x1d4   : > { %v1172_v18 = vadd.f32 %v2196_v43, %v1106_v39  ;;  %v1111_v0 = vmul.f32 %v2194_v7, %v1045_v51  ;;  %v1173_v22 = vadd.f32 %v2196_v43, %v1107_v46  ;;  %v1048_v53 = vld [vmem:[#allocation2 + $0x110] sm:$0xff]  ;;  %v1176_v59 = vadd.f32 %v2196_v43, %v1110_v55  ;;  %v1050_v1 = vld [vmem:[#allocation2 + $0x98] sm:$0xff]  ;;  %v1051_v48 = vld [vmem:[#allocation2 + $0x120] sm:$0xff] }
 0x1d5   : > { %v1174_v56 = vadd.f32 %v2196_v43, %v1108_v14  ;;  %v1175_v35 = vadd.f32 %v2196_v43, %v1109_v13  ;;  %v1235_v25 = vmax.f32 %v1171_v28, 0.0  ;;  %v1178_v29 = vadd.f32 %v2196_v43, %v1112_v21  ;;  %v1052_v54 = vld [vmem:[#allocation2 + $0x150] sm:$0xff]  ;;  %v1053_v2 = vld [vmem:[#allocation2 + $0x108] sm:$0xff]  ;;  %v1054_v44 = vld [vmem:[#allocation2 + $0x60] sm:$0xff] }
 0x1d6   : > { %v1236_v58 = vmax.f32 %v1172_v18, 0.0  ;;  %v1177_v42 = vadd.f32 %v2196_v43, %v1111_v0  ;;  %v1237_v8 = vmax.f32 %v1173_v22, 0.0  ;;  %v1240_v40 = vmax.f32 %v1176_v59, 0.0  ;;  %v1055_v3 = vld [vmem:[#allocation2 + $0xe0] sm:$0xff]  ;;  %v1056_v11 = vld [vmem:[#allocation2 + $0x188] sm:$0xff]  ;;  %v1057_v15 = vld [vmem:[#allocation2 + $0x138] sm:$0xff] }
 0x1d7   : > { %v1238_v45 = vmax.f32 %v1174_v56, 0.0  ;;  %1300 = vst.msk [vmem:[%s2598_s4] sm:$0xff] %vm1299_vm3, %v1235_v25  ;;  %v1239_v57 = vmax.f32 %v1175_v35, 0.0  ;;  %v1113_v12 = vmul.f32 %v2194_v7, %v1047_v38  ;;  %v1114_v16 = vmul.f32 %v2194_v7, %v1048_v53  ;;  %v1058_v41 = vld [vmem:[#allocation2 + $0x140] sm:$0xff]  ;;  %v1060_v39 = vld [vmem:[#allocation2 + $0x1a8] sm:$0xff]  ;;  %v1061_v14 = vld [vmem:[#allocation2 + $0x1b8] sm:$0xff] }
 0x1d8   : > { %1301 = vst.msk [vmem:[%s2598_s4 + $0x8] sm:$0xff] %vm1299_vm3, %v1236_v58  ;;  %v1241_v61 = vmax.f32 %v1177_v42, 0.0  ;;  %v1115_v10 = vmul.f32 %v2194_v7, %v1049_v30  ;;  %v1116_v26 = vmul.f32 %v2194_v7, %v1050_v1  ;;  %v1117_v20 = vmul.f32 %v2194_v7, %v1051_v48  ;;  %v1059_v6 = vld [vmem:[#allocation2 + $0x80] sm:$0xff]  ;;  %v1062_v17 = vld [vmem:[#allocation2 + $0x28] sm:$0xff]  ;;  %v1064_v21 = vld [vmem:[#allocation2 + $0xf8] sm:$0xff] }
 0x1d9   : > { %1302 = vst.msk [vmem:[%s2598_s4 + $0x10] sm:$0xff] %vm1299_vm3, %v1237_v8  ;;  %v1179_v62 = vadd.f32 %v2196_v43, %v1113_v12  ;;  %v1180_v32 = vadd.f32 %v2196_v43, %v1114_v16  ;;  %v1118_v36 = vmul.f32 %v2194_v7, %v1052_v54  ;;  %v1119_v24 = vmul.f32 %v2194_v7, %v1053_v2  ;;  %v1063_v0 = vld [vmem:[#allocation2 + $0x1e8] sm:$0xff]  ;;  %v1065_v58 = vld [vmem:[#allocation2 + $0x160] sm:$0xff]  ;;  %v1066_v1 = vld [vmem:[#allocation2 + $0x30] sm:$0xff] }
 0x1da   : > { %1303 = vst.msk [vmem:[%s2598_s4 + $0x18] sm:$0xff] %vm1299_vm3, %v1238_v45  ;;  %v1242_v33 = vmax.f32 %v1178_v29, 0.0  ;;  %v1181_v60 = vadd.f32 %v2196_v43, %v1115_v10  ;;  %v1182_v52 = vadd.f32 %v2196_v43, %v1116_v26  ;;  %v1120_v34 = vmul.f32 %v2194_v7, %v1054_v44  ;;  %v1067_v29 = vld [vmem:[#allocation2 + $0x1e0] sm:$0xff] }
 0x1db   : > { %1304 = vst.msk [vmem:[%s2598_s4 + $0x20] sm:$0xff] %vm1299_vm3, %v1239_v57  ;;  %v1243_v63 = vmax.f32 %v1179_v62, 0.0  ;;  %v1183_v37 = vadd.f32 %v2196_v43, %v1117_v20  ;;  %v1244_v4 = vmax.f32 %v1180_v32, 0.0  ;;  %v1184_v19 = vadd.f32 %v2196_v43, %v1118_v36  ;;  %v1070_v62 = vld [vmem:[#allocation2 + $0x8] sm:$0xff] }
 0x1dc   : > { %1305 = vst.msk [vmem:[%s2598_s4 + $0x28] sm:$0xff] %vm1299_vm3, %v1240_v40  ;;  %v1245_v9 = vmax.f32 %v1181_v60, 0.0  ;;  %v1185_v23 = vadd.f32 %v2196_v43, %v1119_v24  ;;  %v1121_v27 = vmul.f32 %v2194_v7, %v1055_v3  ;;  %v1122_v47 = vmul.f32 %v2194_v7, %v1056_v11  ;;  %v1068_v40 = vld [vmem:[#allocation2] sm:$0xff]  ;;  %v1072_v3 = vld [vmem:[#allocation2 + $0x1d0] sm:$0xff] }
 0x1dd   : > { %1306 = vst.msk [vmem:[%s2598_s4 + $0x30] sm:$0xff] %vm1299_vm3, %v1241_v61  ;;  %v1246_v31 = vmax.f32 %v1182_v52, 0.0  ;;  %v1186_v49 = vadd.f32 %v2196_v43, %v1120_v34  ;;  %v1123_v50 = vmul.f32 %v2194_v7, %v1057_v15  ;;  %v1124_v46 = vmul.f32 %v2194_v7, %v1058_v41  ;;  %v1069_v61 = vld [vmem:[#allocation2 + $0xf0] sm:$0xff]  ;;  %v1073_v15 = vld [vmem:[#allocation2 + $0x100] sm:$0xff] }
 0x1de   : > { %1307 = vst.msk [vmem:[%s2598_s4 + $0x38] sm:$0xff] %vm1299_vm3, %v1242_v33  ;;  %v1247_v13 = vmax.f32 %v1183_v37, 0.0  ;;  %v1187_v5 = vadd.f32 %v2196_v43, %v1121_v27  ;;  %v1125_v51 = vmul.f32 %v2194_v7, %v1059_v6  ;;  %v1248_v28 = vmax.f32 %v1184_v19, 0.0  ;;  %v1071_v33 = vld [vmem:[#allocation2 + $0x148] sm:$0xff] }
 0x1df   : > { %1308 = vst.msk [vmem:[%s2598_s4 + $0x40] sm:$0xff] %vm1299_vm3, %v1243_v63  ;;  %v1188_v18 = vadd.f32 %v2196_v43, %v1122_v47  ;;  %v1126_v55 = vmul.f32 %v2194_v7, %v1060_v39  ;;  %v1249_v22 = vmax.f32 %v1185_v23, 0.0  ;;  %v1189_v56 = vadd.f32 %v2196_v43, %v1123_v50  ;;  %v1074_v6 = vld [vmem:[#allocation2 + $0xc8] sm:$0xff]  ;;  %v1075_v47 = vld [vmem:[#allocation2 + $0x40] sm:$0xff]  ;;  %v1076_v50 = vld [vmem:[#allocation2 + $0x1f8] sm:$0xff] }
 0x1e0   : > { %1309 = vst.msk [vmem:[%s2598_s4 + $0x48] sm:$0xff] %vm1299_vm3, %v1244_v4  ;;  %v1127_v35 = vmul.f32 %v2194_v7, %v1061_v14  ;;  %v1250_v38 = vmax.f32 %v1186_v49, 0.0  ;;  %v1190_v53 = vadd.f32 %v2196_v43, %v1124_v46  ;;  %v1128_v25 = vmul.f32 %v2194_v7, %v1062_v17 }
 0x1e1   : > { %1310 = vst.msk [vmem:[%s2598_s4 + $0x50] sm:$0xff] %vm1299_vm3, %v1245_v9  ;;  %v1251_v59 = vmax.f32 %v1187_v5, 0.0  ;;  %v1191_v42 = vadd.f32 %v2196_v43, %v1125_v51  ;;  %v1129_v30 = vmul.f32 %v2194_v7, %v1063_v0  ;;  %v1252_v48 = vmax.f32 %v1188_v18, 0.0  ;;  %v1077_v5 = vld [vmem:[#allocation2 + $0x20] sm:$0xff]  ;;  %v1078_v18 = vld [vmem:[#allocation2 + $0x128] sm:$0xff] }
 0x1e2   : > { %1311 = vst.msk [vmem:[%s2598_s4 + $0x58] sm:$0xff] %vm1299_vm3, %v1246_v31  ;;  %v1192_v8 = vadd.f32 %v2196_v43, %v1126_v55  ;;  %v1130_v45 = vmul.f32 %v2194_v7, %v1064_v21  ;;  %v1253_v54 = vmax.f32 %v1189_v56, 0.0  ;;  %v1193_v2 = vadd.f32 %v2196_v43, %v1127_v35  ;;  %v1079_v56 = vld [vmem:[#allocation2 + $0x1a0] sm:$0xff] }
 0x1e3   : > { %1312 = vst.msk [vmem:[%s2598_s4 + $0x60] sm:$0xff] %vm1299_vm3, %v1247_v13  ;;  %v1131_v57 = vmul.f32 %v2194_v7, %v1065_v58  ;;  %v1254_v12 = vmax.f32 %v1190_v53, 0.0  ;;  %v1194_v16 = vadd.f32 %v2196_v43, %v1128_v25  ;;  %v1132_v44 = vmul.f32 %v2194_v7, %v1066_v1  ;;  %v1080_v53 = vld [vmem:[#allocation2 + $0x1f0] sm:$0xff] }
 0x1e4   : > { %1313 = vst.msk [vmem:[%s2598_s4 + $0x68] sm:$0xff] %vm1299_vm3, %v1248_v28  ;;  %v1255_v10 = vmax.f32 %v1191_v42, 0.0  ;;  %v1195_v26 = vadd.f32 %v2196_v43, %v1129_v30  ;;  %v1133_v20 = vmul.f32 %v2194_v7, %v1067_v29  ;;  %v1256_v32 = vmax.f32 %v1192_v8, 0.0  ;;  %v1081_v42 = vld [vmem:[#allocation2 + $0xe8] sm:$0xff]  ;;  %v1082_v8 = vld [vmem:[#allocation2 + $0x78] sm:$0xff] }
 0x1e5   : > { %1314 = vst.msk [vmem:[%s2598_s4 + $0x70] sm:$0xff] %vm1299_vm3, %v1249_v22  ;;  %v1196_v36 = vadd.f32 %v2196_v43, %v1130_v45  ;;  %v1134_v24 = vmul.f32 %v2194_v7, %v1068_v40  ;;  %v1257_v60 = vmax.f32 %v1193_v2, 0.0  ;;  %v1197_v52 = vadd.f32 %v2196_v43, %v1131_v57  ;;  %v1083_v2 = vld [vmem:[#allocation2 + $0x70] sm:$0xff] }
 0x1e6   : > { %1315 = vst.msk [vmem:[%s2598_s4 + $0x78] sm:$0xff] %vm1299_vm3, %v1250_v38  ;;  %v1135_v34 = vmul.f32 %v2194_v7, %v1069_v61  ;;  %v1258_v11 = vmax.f32 %v1194_v16, 0.0  ;;  %v1198_v63 = vadd.f32 %v2196_v43, %v1132_v44  ;;  %v1136_v37 = vmul.f32 %v2194_v7, %v1070_v62  ;;  %v1084_v16 = vld [vmem:[#allocation2 + $0x90] sm:$0xff] }
 0x1e7   : > { %1316 = vst.msk [vmem:[%s2598_s4 + $0x80] sm:$0xff] %vm1299_vm3, %v1251_v59  ;;  %v1259_v41 = vmax.f32 %v1195_v26, 0.0  ;;  %v1199_v4 = vadd.f32 %v2196_v43, %v1133_v20  ;;  %v1137_v19 = vmul.f32 %v2194_v7, %v1071_v33  ;;  %v1260_v9 = vmax.f32 %v1196_v36, 0.0  ;;  %v1085_v26 = vld [vmem:[#allocation2 + $0x1d8] sm:$0xff]  ;;  %v1086_v36 = vld [vmem:[#allocation2 + $0xd0] sm:$0xff] }
 0x1e8   : > { %1317 = vst.msk [vmem:[%s2598_s4 + $0x88] sm:$0xff] %vm1299_vm3, %v1252_v48  ;;  %v1200_v23 = vadd.f32 %v2196_v43, %v1134_v24  ;;  %v1138_v27 = vmul.f32 %v2194_v7, %v1072_v3  ;;  %v1261_v39 = vmax.f32 %v1197_v52, 0.0  ;;  %v1201_v31 = vadd.f32 %v2196_v43, %v1135_v34  ;;  %v1087_v52 = vld [vmem:[#allocation2 + $0xb8] sm:$0xff] }
 0x1e9   : > { %1318 = vst.msk [vmem:[%s2598_s4 + $0x90] sm:$0xff] %vm1299_vm3, %v1253_v54  ;;  %v1139_v49 = vmul.f32 %v2194_v7, %v1073_v15  ;;  %v1262_v46 = vmax.f32 %v1198_v63, 0.0  ;;  %v1202_v14 = vadd.f32 %v2196_v43, %v1136_v37  ;;  %v1140_v13 = vmul.f32 %v2194_v7, %v1074_v6  ;;  %v1088_v63 = vld [vmem:[#allocation2 + $0x88] sm:$0xff] }
 0x1ea   : > { %1319 = vst.msk [vmem:[%s2598_s4 + $0x98] sm:$0xff] %vm1299_vm3, %v1254_v12  ;;  %v1263_v51 = vmax.f32 %v1199_v4, 0.0  ;;  %v1203_v17 = vadd.f32 %v2196_v43, %v1137_v19  ;;  %v1141_v28 = vmul.f32 %v2194_v7, %v1075_v47  ;;  %v1264_v55 = vmax.f32 %v1200_v23, 0.0  ;;  %v1089_v4 = vld [vmem:[#allocation2 + $0xa8] sm:$0xff] }
 0x1eb   : > { %1320 = vst.msk [vmem:[%s2598_s4 + $0xa0] sm:$0xff] %vm1299_vm3, %v1255_v10  ;;  %v1204_v0 = vadd.f32 %v2196_v43, %v1138_v27  ;;  %v1142_v22 = vmul.f32 %v2194_v7, %v1076_v50  ;;  %v1265_v35 = vmax.f32 %v1201_v31, 0.0  ;;  %v1205_v21 = vadd.f32 %v2196_v43, %v1139_v49  ;;  %v1090_v23 = vld [vmem:[#allocation2 + $0x1c8] sm:$0xff]  ;;  %v1102_v27 = vld [vmem:[#allocation2 + $0xa0] sm:$0xff]  ;;  %v1091_v49 = vld [vmem:[#allocation2 + $0x170] sm:$0xff] }
 0x1ec   : > { %1321 = vst.msk [vmem:[%s2598_s4 + $0xa8] sm:$0xff] %vm1299_vm3, %v1256_v32  ;;  %v1143_v38 = vmul.f32 %v2194_v7, %v1077_v5  ;;  %v1266_v25 = vmax.f32 %v1202_v14, 0.0  ;;  %v1206_v58 = vadd.f32 %v2196_v43, %v1140_v13  ;;  %v1144_v59 = vmul.f32 %v2194_v7, %v1078_v18  ;;  %v1092_v13 = vld [vmem:[#allocation2 + $0x178] sm:$0xff] }
 0x1ed   : > { %1322 = vst.msk [vmem:[%s2598_s4 + $0xb0] sm:$0xff] %vm1299_vm3, %v1257_v60  ;;  %v1267_v30 = vmax.f32 %v1203_v17, 0.0  ;;  %v1207_v1 = vadd.f32 %v2196_v43, %v1141_v28  ;;  %v1145_v48 = vmul.f32 %v2194_v7, %v1079_v56  ;;  %v1268_v45 = vmax.f32 %v1204_v0, 0.0  ;;  %v1093_v28 = vld [vmem:[#allocation2 + $0x68] sm:$0xff]  ;;  %v1094_v56 = vld [vmem:[#allocation2 + $0x190] sm:$0xff] }
 0x1ee   : > { %1323 = vst.msk [vmem:[%s2598_s4 + $0xb8] sm:$0xff] %vm1299_vm3, %v1258_v11  ;;  %v1208_v29 = vadd.f32 %v2196_v43, %v1142_v22  ;;  %v1146_v54 = vmul.f32 %v2194_v7, %v1080_v53  ;;  %v1269_v57 = vmax.f32 %v1205_v21, 0.0  ;;  %v1209_v40 = vadd.f32 %v2196_v43, %v1143_v38  ;;  %v1095_v53 = vld [vmem:[#allocation2 + $0x198] sm:$0xff] }
 0x1ef   : > { %1324 = vst.msk [vmem:[%s2598_s4 + $0xc0] sm:$0xff] %vm1299_vm3, %v1259_v41  ;;  %v1147_v12 = vmul.f32 %v2194_v7, %v1081_v42  ;;  %v1270_v44 = vmax.f32 %v1206_v58, 0.0  ;;  %v1210_v61 = vadd.f32 %v2196_v43, %v1144_v59  ;;  %v1148_v10 = vmul.f32 %v2194_v7, %v1082_v8 }
 0x1f0   : > { %1325 = vst.msk [vmem:[%s2598_s4 + $0xc8] sm:$0xff] %vm1299_vm3, %v1260_v9  ;;  %v1271_v20 = vmax.f32 %v1207_v1, 0.0  ;;  %v1211_v62 = vadd.f32 %v2196_v43, %v1145_v48  ;;  %v1149_v32 = vmul.f32 %v2194_v7, %v1083_v2  ;;  %v1272_v24 = vmax.f32 %v1208_v29, 0.0 }
 0x1f1   : > { %1326 = vst.msk [vmem:[%s2598_s4 + $0xd0] sm:$0xff] %vm1299_vm3, %v1261_v39  ;;  %v1212_v33 = vadd.f32 %v2196_v43, %v1146_v54  ;;  %v1150_v60 = vmul.f32 %v2194_v7, %v1084_v16  ;;  %v1273_v34 = vmax.f32 %v1209_v40, 0.0  ;;  %v1213_v3 = vadd.f32 %v2196_v43, %v1147_v12 }
 0x1f2   : > { %1327 = vst.msk [vmem:[%s2598_s4 + $0xd8] sm:$0xff] %vm1299_vm3, %v1262_v46  ;;  %v1151_v11 = vmul.f32 %v2194_v7, %v1085_v26  ;;  %v1274_v37 = vmax.f32 %v1210_v61, 0.0  ;;  %v1214_v15 = vadd.f32 %v2196_v43, %v1148_v10  ;;  %v1152_v41 = vmul.f32 %v2194_v7, %v1086_v36 }
 0x1f3   : > { %1328 = vst.msk [vmem:[%s2598_s4 + $0xe0] sm:$0xff] %vm1299_vm3, %v1263_v51  ;;  %v1275_v19 = vmax.f32 %v1211_v62, 0.0  ;;  %v1215_v6 = vadd.f32 %v2196_v43, %v1149_v32  ;;  %v1153_v9 = vmul.f32 %v2194_v7, %v1087_v52  ;;  %v1276_v47 = vmax.f32 %v1212_v33, 0.0 }
 0x1f4   : > { %1329 = vst.msk [vmem:[%s2598_s4 + $0xe8] sm:$0xff] %vm1299_vm3, %v1264_v55  ;;  %v1216_v39 = vadd.f32 %v2196_v43, %v1150_v60  ;;  %v1154_v31 = vmul.f32 %v2194_v7, %v1088_v63  ;;  %v1277_v50 = vmax.f32 %v1213_v3, 0.0  ;;  %v1217_v46 = vadd.f32 %v2196_v43, %v1151_v11 }
 0x1f5   : > { %1330 = vst.msk [vmem:[%s2598_s4 + $0xf0] sm:$0xff] %vm1299_vm3, %v1265_v35  ;;  %v1155_v14 = vmul.f32 %v2194_v7, %v1089_v4  ;;  %v1278_v5 = vmax.f32 %v1214_v15, 0.0  ;;  %v1218_v51 = vadd.f32 %v2196_v43, %v1152_v41  ;;  %v1156_v17 = vmul.f32 %v2194_v7, %v1090_v23 }
 0x1f6   : > { %1331 = vst.msk [vmem:[%s2598_s4 + $0xf8] sm:$0xff] %vm1299_vm3, %v1266_v25  ;;  %v1168_v18 = vmul.f32 %v2194_v7, %v1102_v27  ;;  %v1279_v55 = vmax.f32 %v1215_v6, 0.0  ;;  %v1219_v0 = vadd.f32 %v2196_v43, %v1153_v9  ;;  %v1157_v22 = vmul.f32 %v2194_v7, %v1091_v49 }
 0x1f7   : > { %1332 = vst.msk [vmem:[%s2598_s4 + $0x100] sm:$0xff] %vm1299_vm3, %v1267_v30  ;;  %v1280_v35 = vmax.f32 %v1216_v39, 0.0  ;;  %v1220_v21 = vadd.f32 %v2196_v43, %v1154_v31  ;;  %v1158_v38 = vmul.f32 %v2194_v7, %v1092_v13  ;;  %v1281_v58 = vmax.f32 %v1217_v46, 0.0  ;;  %v1096_v30 = vld [vmem:[#allocation2 + $0x38] sm:$0xff] }
 0x1f8   : > { %1333 = vst.msk [vmem:[%s2598_s4 + $0x108] sm:$0xff] %vm1299_vm3, %v1268_v45  ;;  %v2472_v25 = vadd.f32 %v2196_v43, %v1168_v18  ;;  %v1221_v59 = vadd.f32 %v2196_v43, %v1155_v14  ;;  %v1159_v42 = vmul.f32 %v2194_v7, %v1093_v28  ;;  %v1282_v1 = vmax.f32 %v1218_v51, 0.0  ;;  %v1097_v45 = vld [vmem:[#allocation2 + $0xc0] sm:$0xff] }
 0x1f9   : > { %1334 = vst.msk [vmem:[%s2598_s4 + $0x110] sm:$0xff] %vm1299_vm3, %v1269_v57  ;;  %v1222_v48 = vadd.f32 %v2196_v43, %v1156_v17  ;;  %v1160_v8 = vmul.f32 %v2194_v7, %v1094_v56  ;;  %v1283_v29 = vmax.f32 %v1219_v0, 0.0  ;;  %v1223_v54 = vadd.f32 %v2196_v43, %v1157_v22  ;;  %v1098_v57 = vld [vmem:[#allocation2 + $0x1c0] sm:$0xff] }
 0x1fa   : > { %1335 = vst.msk [vmem:[%s2598_s4 + $0x118] sm:$0xff] %vm1299_vm3, %v1270_v44  ;;  %v1161_v2 = vmul.f32 %v2194_v7, %v1095_v53  ;;  %v1284_v40 = vmax.f32 %v1220_v21, 0.0  ;;  %v1224_v12 = vadd.f32 %v2196_v43, %v1158_v38  ;;  %v1162_v16 = vmul.f32 %v2194_v7, %v1096_v30  ;;  %v1099_v44 = vld [vmem:[#allocation2 + $0x158] sm:$0xff] }
 0x1fb   : > { %1336 = vst.msk [vmem:[%s2598_s4 + $0x120] sm:$0xff] %vm1299_vm3, %v1271_v20  ;;  %v1285_v61 = vmax.f32 %v1221_v59, 0.0  ;;  %v1225_v10 = vadd.f32 %v2196_v43, %v1159_v42  ;;  %v1163_v26 = vmul.f32 %v2194_v7, %v1097_v45  ;;  %v1100_v20 = vld [vmem:[#allocation2 + $0x10] sm:$0xff]  ;;  %v1286_v62 = vmax.f32 %v1222_v48, 0.0 }
 0x1fc   : > { %1337 = vst.msk [vmem:[%s2598_s4 + $0x128] sm:$0xff] %vm1299_vm3, %v1272_v24  ;;  %v1226_v32 = vadd.f32 %v2196_v43, %v1160_v8  ;;  %v1164_v36 = vmul.f32 %v2194_v7, %v1098_v57  ;;  %v1101_v24 = vld [vmem:[#allocation2 + $0x58] sm:$0xff]  ;;  %v1287_v33 = vmax.f32 %v1223_v54, 0.0  ;;  %v1227_v60 = vadd.f32 %v2196_v43, %v1161_v2 }
 0x1fd   : > { %1338 = vst.msk [vmem:[%s2598_s4 + $0x130] sm:$0xff] %vm1299_vm3, %v1273_v34  ;;  %v1165_v52 = vmul.f32 %v2194_v7, %v1099_v44  ;;  %v1288_v34 = vmax.f32 %v1224_v12, 0.0  ;;  %v1228_v3 = vadd.f32 %v2196_v43, %v1162_v16  ;;  %v1166_v11 = vmul.f32 %v2194_v7, %v1100_v20 }
 0x1fe   : > { %1339 = vst.msk [vmem:[%s2598_s4 + $0x138] sm:$0xff] %vm1299_vm3, %v1274_v37  ;;  %v1289_v63 = vmax.f32 %v1225_v10, 0.0  ;;  %v1229_v37 = vadd.f32 %v2196_v43, %v1163_v26  ;;  %v1167_v15 = vmul.f32 %v2194_v7, %v1101_v24  ;;  %v1290_v41 = vmax.f32 %v1226_v32, 0.0 }
 0x1ff   : > { %1340 = vst.msk [vmem:[%s2598_s4 + $0x140] sm:$0xff] %vm1299_vm3, %v1275_v19  ;;  %v1230_v4 = vadd.f32 %v2196_v43, %v1164_v36  ;;  %v1291_v19 = vmax.f32 %v1227_v60, 0.0  ;;  %v1231_v6 = vadd.f32 %v2196_v43, %v1165_v52  ;;  %v1292_v7 = vmax.f32 %v1228_v3, 0.0 }
 0x200   : > { %1341 = vst.msk [vmem:[%s2598_s4 + $0x148] sm:$0xff] %vm1299_vm3, %v1276_v47  ;;  %v1232_v9 = vadd.f32 %v2196_v43, %v1166_v11  ;;  %v1293_v23 = vmax.f32 %v1229_v37, 0.0  ;;  %v1233_v27 = vadd.f32 %v2196_v43, %v1167_v15  ;;  %v1298_v49 = vmax.f32 %v2472_v25, 0.0 }
 0x201   : > { %1342 = vst.msk [vmem:[%s2598_s4 + $0x150] sm:$0xff] %vm1299_vm3, %v1277_v50  ;;  %v1294_v47 = vmax.f32 %v1230_v4, 0.0  ;;  %v1295_v39 = vmax.f32 %v1231_v6, 0.0 }
 0x202   : > { %1343 = vst.msk [vmem:[%s2598_s4 + $0x158] sm:$0xff] %vm1299_vm3, %v1278_v5  ;;  %v1296_v31 = vmax.f32 %v1232_v9, 0.0  ;;  %v1297_v43 = vmax.f32 %v1233_v27, 0.0 }
 0x203   : > { %1344 = vst.msk [vmem:[%s2598_s4 + $0x160] sm:$0xff] %vm1299_vm3, %v1279_v55 }
 0x204   : > { %1345 = vst.msk [vmem:[%s2598_s4 + $0x168] sm:$0xff] %vm1299_vm3, %v1280_v35 }
 0x205   : > { %1346 = vst.msk [vmem:[%s2598_s4 + $0x170] sm:$0xff] %vm1299_vm3, %v1281_v58 }
 0x206   : > { %1347 = vst.msk [vmem:[%s2598_s4 + $0x178] sm:$0xff] %vm1299_vm3, %v1282_v1 }
 0x207   : > { %1348 = vst.msk [vmem:[%s2598_s4 + $0x180] sm:$0xff] %vm1299_vm3, %v1283_v29 }
 0x208   : > { %1349 = vst.msk [vmem:[%s2598_s4 + $0x188] sm:$0xff] %vm1299_vm3, %v1284_v40 }
 0x209   : > { %1350 = vst.msk [vmem:[%s2598_s4 + $0x190] sm:$0xff] %vm1299_vm3, %v1285_v61 }
 0x20a   : > { %1351 = vst.msk [vmem:[%s2598_s4 + $0x198] sm:$0xff] %vm1299_vm3, %v1286_v62 }
 0x20b   : > { %1352 = vst.msk [vmem:[%s2598_s4 + $0x1a0] sm:$0xff] %vm1299_vm3, %v1287_v33 }
 0x20c   : > { %1353 = vst.msk [vmem:[%s2598_s4 + $0x1a8] sm:$0xff] %vm1299_vm3, %v1288_v34 }
 0x20d   : > { %1354 = vst.msk [vmem:[%s2598_s4 + $0x1b0] sm:$0xff] %vm1299_vm3, %v1289_v63 }
 0x20e   : > { %1355 = vst.msk [vmem:[%s2598_s4 + $0x1b8] sm:$0xff] %vm1299_vm3, %v1290_v41 }
 0x20f   : > { %1356 = vst.msk [vmem:[%s2598_s4 + $0x1c0] sm:$0xff] %vm1299_vm3, %v1291_v19 }
 0x210   : > { %1357 = vst.msk [vmem:[%s2598_s4 + $0x1c8] sm:$0xff] %vm1299_vm3, %v1292_v7 }
 0x211   : > { %1358 = vst.msk [vmem:[%s2598_s4 + $0x1d0] sm:$0xff] %vm1299_vm3, %v1293_v23 }
 0x212   : > { %1359 = vst.msk [vmem:[%s2598_s4 + $0x1d8] sm:$0xff] %vm1299_vm3, %v1294_v47 }
 0x213   : > { %1360 = vst.msk [vmem:[%s2598_s4 + $0x1e0] sm:$0xff] %vm1299_vm3, %v1295_v39 }
 0x214   : > { %1361 = vst.msk [vmem:[%s2598_s4 + $0x1e8] sm:$0xff] %vm1299_vm3, %v1296_v31 }
 0x215   : > { %1362 = vst.msk [vmem:[%s2598_s4 + $0x1f0] sm:$0xff] %vm1299_vm3, %v1297_v43 }
 0x216   : > { %1363 = vst.msk [vmem:[%s2598_s4 + $0x1f8] sm:$0xff] %vm1299_vm3, %v1298_v49 }
 0x217 PF: > { %s14_s17 = sadd.s32 1, %s1725_s17   ;;  %s2599_s15 = smov %s1721_s16 }
 0x218   : > { %p11_p7 = scmp.ge.s32.totalorder %s14_s17, 4   ;;  %s2600_s16 = smov %s2602_s18 }
 0x21a   :  { %13 = sbr.rel (!%p11_p7) target bundleno = 2 (0x2), region = 84 }

</bundles_post_ra>
